<compile_context>
chip_gen: v7x
topology: tpu7x:2x2x1
jax: 0.10.0
libtpu: 0.0.40
codegen_flags: <defaults>
</compile_context>

<pallas_src>
import functools

import numpy as np
import jax
import jax.numpy as jnp
from jax.experimental import pallas as pl
from jax.experimental.pallas import tpu as pltpu


def prompt_kernel(x_ref, as_ref, br_ref, bi_ref, ur_ref, ui_ref,
                  vr_ref, vi_ref, dp_ref, out_ref, low_ref, *, ps):
    """One image (all C channels): rank-ps^2 spectral correction + amp crop."""
    dot = functools.partial(jnp.dot, preferred_element_type=jnp.float32,
                            precision=jax.lax.Precision.HIGHEST)
    AS = as_ref[...]                      # (2*PS, H)  forward rows  [cos; -sin]
    BR, BI = br_ref[...], bi_ref[...]     # (W, PS)    forward cols  e^{-i}
    Ur, Ui = ur_ref[...], ui_ref[...]     # (H, PS)    inverse rows  e^{+i}
    Vr, Vi = vr_ref[...], vi_ref[...]     # (PS, W)    inverse cols  e^{+i}
    PS = Vr.shape[0]
    C = x_ref.shape[0]

    for c in range(C):                    # tiny per-channel work, constants resident
        x = x_ref[c]                                     # (H, W)

        # ---- partial forward DFT: only the ps^2 selected frequency bins ----
        t = dot(AS, x)                                   # (2PS, W) = [t_re; t_im]
        t_re, t_im = t[:PS], t[PS:]
        fr = dot(t_re, BR) - dot(t_im, BI)               # (PS, PS)  Re F[k_r, l_c]
        fi = dot(t_re, BI) + dot(t_im, BR)               # (PS, PS)  Im F[k_r, l_c]

        # ---- low-frequency amplitude crop ----
        low_ref[c] = jnp.sqrt(fr * fr + fi * fi)[:ps, :ps]

        # ---- rank-ps^2 correction:  src = x + Re(ifft2(F * (prompt - 1))) ----
        dp = dp_ref[c]                                   # (PS, PS): (prompt-1)/(H*W)
        cr = fr * dp
        ci = fi * dp
        m1 = dot(cr, Vr) - dot(ci, Vi)                   # (PS, W)
        m2 = -(dot(ci, Vr) + dot(cr, Vi))                # (PS, W)
        out_ref[c] = x + dot(Ur, m1) + dot(Ui, m2)


def _phase_consts(H, W, pad, ps):
    """Host-side phase matrices for the ps^2 selected bins, zero-padded to PS."""
    PS = max(8, ((ps + 7) // 8) * 8)                 # sublane-aligned ps padding
    kr = (pad + np.arange(ps) - H // 2) % H          # selected frequency rows
    lc = (pad + np.arange(ps) - W // 2) % W          # selected frequency cols
    # exact integer phase reduction -> max float64 trig accuracy
    th = 2.0 * np.pi * ((np.outer(kr, np.arange(H)) % H) / H)   # (ps, H)
    ph = 2.0 * np.pi * ((np.outer(lc, np.arange(W)) % W) / W)   # (ps, W)

    AS = np.zeros((2 * PS, H), np.float32)           # forward row stage e^{-i th}
    AS[:ps] = np.cos(th)
    AS[PS:PS + ps] = -np.sin(th)

    BR = np.zeros((W, PS), np.float32)               # forward col stage e^{-i ph}
    BI = np.zeros((W, PS), np.float32)
    BR[:, :ps] = np.cos(ph).T
    BI[:, :ps] = -np.sin(ph).T

    Ur = np.zeros((H, PS), np.float32)               # inverse row stage e^{+i th}
    Ui = np.zeros((H, PS), np.float32)
    Ur[:, :ps] = np.cos(th).T
    Ui[:, :ps] = np.sin(th).T

    Vr = np.zeros((PS, W), np.float32)               # inverse col stage e^{+i ph}
    Vi = np.zeros((PS, W), np.float32)
    Vr[:ps] = np.cos(ph)
    Vi[:ps] = np.sin(ph)

    return PS, (jnp.asarray(AS), jnp.asarray(BR), jnp.asarray(BI),
                jnp.asarray(Ur), jnp.asarray(Ui), jnp.asarray(Vr),
                jnp.asarray(Vi))


def prompt_forward(x, data_prompt, padding_size, prompt_size):
    """Pallas implementation of Prompt.forward. Returns (src_in_trg, amp_low_)."""
    B, C, H, W = x.shape
    pad, ps = padding_size, prompt_size
    PS, (AS, BR, BI, Ur, Ui, Vr, Vi) = _phase_consts(H, W, pad, ps)

    # (prompt - 1) / (H*W) per channel, zero-padded to (C, PS, PS).
    # torch.fft.fftshift/ifftshift are dim-less, so they also roll the channel
    # axis: data channel c is effectively multiplied by prompt channel
    # (c + C//2) % C.  Fold that permutation in here.
    dp_win = (data_prompt[0].astype(jnp.float32) - 1.0) * (1.0 / (H * W))
    dp_win = jnp.roll(dp_win, shift=-(C // 2), axis=0)
    dp = jnp.zeros((C, PS, PS), jnp.float32).at[:, :ps, :ps].set(dp_win)

    c2 = lambda b: (0, 0)
    c3 = lambda b: (0, 0, 0)

    src, low_nat = pl.pallas_call(
        functools.partial(prompt_kernel, ps=ps),
        out_shape=(jax.ShapeDtypeStruct((B, C, H, W), jnp.float32),
                   jax.ShapeDtypeStruct((B, C, ps, ps), jnp.float32)),
        grid_spec=pltpu.PrefetchScalarGridSpec(
            num_scalar_prefetch=0,
            grid=(B,),
            in_specs=[
                pl.BlockSpec((None, C, H, W), lambda b: (b, 0, 0, 0)),  # x (all C)
                pl.BlockSpec((2 * PS, H), c2),                          # AS
                pl.BlockSpec((W, PS), c2),                              # BR
                pl.BlockSpec((W, PS), c2),                              # BI
                pl.BlockSpec((H, PS), c2),                              # Ur
                pl.BlockSpec((H, PS), c2),                              # Ui
                pl.BlockSpec((PS, W), c2),                              # Vr
                pl.BlockSpec((PS, W), c2),                              # Vi
                pl.BlockSpec((C, PS, PS), c3),                          # dp
            ],
            out_specs=(
                pl.BlockSpec((None, C, H, W), lambda b: (b, 0, 0, 0)),
                pl.BlockSpec((None, C, ps, ps), lambda b: (b, 0, 0, 0)),
            ),
        ),
        compiler_params=pltpu.CompilerParams(
            dimension_semantics=("parallel",),
            vmem_limit_bytes=32 * 1024 * 1024),
    )(x.astype(jnp.float32), AS, BR, BI, Ur, Ui, Vr, Vi, dp)

    # torch's dim-less fftshift also rolls the batch & channel axes before the
    # amp_low crop; apply that (tiny, (B, C, ps, ps)) roll here.
    amp_low = jnp.roll(low_nat, shift=(B // 2, C // 2), axis=(0, 1))
    return src, amp_low


class PromptPallas:
    """JAX/Pallas port of the PyTorch `Prompt` module's forward pass."""

    def __init__(self, prompt_alpha=0.01, image_size=224):
        ps = int(image_size * prompt_alpha)
        self.prompt_size = ps if ps > 1 else 1
        self.padding_size = (image_size - self.prompt_size) // 2
        self.image_size = image_size
        # deterministic init, same as torch.ones((1, 3, ps, ps))
        self.data_prompt = jnp.ones((1, 3, self.prompt_size, self.prompt_size),
                                    jnp.float32)

    def update(self, init_data):
        self.data_prompt = jnp.asarray(init_data, jnp.float32)

    def __call__(self, x):
        return prompt_forward(x, self.data_prompt, self.padding_size,
                              self.prompt_size)


if __name__ == "__main__":
    B, C, H, W = 2, 3, 16, 16
    key = jax.random.PRNGKey(0)
    x = jax.random.normal(key, (B, C, H, W), jnp.float32)

    # image_size=16, alpha=0.125 -> prompt_size=2, padding_size=7
    model = PromptPallas(prompt_alpha=0.125, image_size=16)
    ps, pad = model.prompt_size, model.padding_size
    # deterministic non-trivial per-channel prompt, as if set via update()
    model.update(jnp.linspace(0.5, 1.5, 3 * ps * ps,
                              dtype=jnp.float32).reshape(1, 3, ps, ps))

    src, amp_low = model(x)
    src, amp_low = jax.block_until_ready((src, amp_low))

    # ---- pure-JAX reference mirroring the PyTorch forward line-by-line ----
    # (fftshift / ifftshift with default axes == all axes, exactly like torch)
    fft = jnp.fft.fft2(x, axes=(-2, -1))
    amp, pha = jnp.abs(fft), jnp.angle(fft)
    amp_s = jnp.fft.fftshift(amp)
    prompt_full = jnp.ones((1, C, H, W), jnp.float32)
    prompt_full = prompt_full.at[:, :, pad:pad + ps, pad:pad + ps].set(model.data_prompt)
    amp_ = jnp.fft.ifftshift(amp_s * prompt_full)
    low_expected = amp_s[:, :, pad:pad + ps, pad:pad + ps]
    src_expected = jnp.fft.ifft2(jnp.cos(pha) * amp_ + 1j * jnp.sin(pha) * amp_,
                                 axes=(-2, -1)).real

    assert src.shape == (B, C, H, W) and amp_low.shape == (B, C, ps, ps)
    assert jnp.allclose(src, src_expected, atol=2e-3, rtol=2e-3), \
        float(jnp.max(jnp.abs(src - src_expected)))
    assert jnp.allclose(amp_low, low_expected, atol=2e-3, rtol=2e-3), \
        float(jnp.max(jnp.abs(amp_low - low_expected)))

    print("KERNEL_OK")
</pallas_src>

<mosaic_0001>
module attributes {stable_mosaic.version = 11 : i64} {
  func.func @prompt_kernel(%arg0: i32, %arg1: memref<1x3x16x16xf32, #tpu.memory_space<vmem>>, %arg2: memref<16x16xf32, #tpu.memory_space<vmem>>, %arg3: memref<16x8xf32, #tpu.memory_space<vmem>>, %arg4: memref<16x8xf32, #tpu.memory_space<vmem>>, %arg5: memref<16x8xf32, #tpu.memory_space<vmem>>, %arg6: memref<16x8xf32, #tpu.memory_space<vmem>>, %arg7: memref<8x16xf32, #tpu.memory_space<vmem>>, %arg8: memref<8x16xf32, #tpu.memory_space<vmem>>, %arg9: memref<3x8x8xf32, #tpu.memory_space<vmem>>, %arg10: memref<1x3x16x16xf32, #tpu.memory_space<vmem>>, %arg11: memref<1x3x2x2xf32, #tpu.memory_space<vmem>>) attributes {dimension_semantics = [#tpu.dimension_semantics<parallel>], iteration_bounds = array<i64: 2>, scalar_prefetch = 0 : i64, scratch_operands = 0 : i64, tpu.core_type = #tpu.core_type<tc>, window_params = [{transform_indices = @transform_0, window_bounds = array<i64: 1, 3, 16, 16>}, {pipeline_mode = #tpu.pipeline_mode<synchronous>, transform_indices = @transform_1, window_bounds = array<i64: 16, 16>}, {pipeline_mode = #tpu.pipeline_mode<synchronous>, transform_indices = @transform_2, window_bounds = array<i64: 16, 8>}, {pipeline_mode = #tpu.pipeline_mode<synchronous>, transform_indices = @transform_3, window_bounds = array<i64: 16, 8>}, {pipeline_mode = #tpu.pipeline_mode<synchronous>, transform_indices = @transform_4, window_bounds = array<i64: 16, 8>}, {pipeline_mode = #tpu.pipeline_mode<synchronous>, transform_indices = @transform_5, window_bounds = array<i64: 16, 8>}, {pipeline_mode = #tpu.pipeline_mode<synchronous>, transform_indices = @transform_6, window_bounds = array<i64: 8, 16>}, {pipeline_mode = #tpu.pipeline_mode<synchronous>, transform_indices = @transform_7, window_bounds = array<i64: 8, 16>}, {pipeline_mode = #tpu.pipeline_mode<synchronous>, transform_indices = @transform_8, window_bounds = array<i64: 3, 8, 8>}, {transform_indices = @transform_9, window_bounds = array<i64: 1, 3, 16, 16>}, {transform_indices = @transform_10, window_bounds = array<i64: 1, 3, 2, 2>}]} {
    %c0 = arith.constant 0 : index
    %c0_0 = arith.constant 0 : index
    %0 = vector.load %arg2[%c0, %c0_0] : memref<16x16xf32, #tpu.memory_space<vmem>>, vector<16x16xf32>
    %c0_1 = arith.constant 0 : index
    %c0_2 = arith.constant 0 : index
    %1 = vector.load %arg3[%c0_1, %c0_2] : memref<16x8xf32, #tpu.memory_space<vmem>>, vector<16x8xf32>
    %c0_3 = arith.constant 0 : index
    %c0_4 = arith.constant 0 : index
    %2 = vector.load %arg4[%c0_3, %c0_4] : memref<16x8xf32, #tpu.memory_space<vmem>>, vector<16x8xf32>
    %c0_5 = arith.constant 0 : index
    %c0_6 = arith.constant 0 : index
    %3 = vector.load %arg5[%c0_5, %c0_6] : memref<16x8xf32, #tpu.memory_space<vmem>>, vector<16x8xf32>
    %c0_7 = arith.constant 0 : index
    %c0_8 = arith.constant 0 : index
    %4 = vector.load %arg6[%c0_7, %c0_8] : memref<16x8xf32, #tpu.memory_space<vmem>>, vector<16x8xf32>
    %c0_9 = arith.constant 0 : index
    %c0_10 = arith.constant 0 : index
    %5 = vector.load %arg7[%c0_9, %c0_10] : memref<8x16xf32, #tpu.memory_space<vmem>>, vector<8x16xf32>
    %c0_11 = arith.constant 0 : index
    %c0_12 = arith.constant 0 : index
    %6 = vector.load %arg8[%c0_11, %c0_12] : memref<8x16xf32, #tpu.memory_space<vmem>>, vector<8x16xf32>
    %c0_13 = arith.constant 0 : index
    %c0_14 = arith.constant 0 : index
    %c0_15 = arith.constant 0 : index
    %c0_16 = arith.constant 0 : index
    %7 = vector.load %arg1[%c0_13, %c0_14, %c0_15, %c0_16] : memref<1x3x16x16xf32, #tpu.memory_space<vmem>>, vector<1x1x16x16xf32>
    %8 = vector.shape_cast %7 : vector<1x1x16x16xf32> to vector<16x16xf32>
    %cst = arith.constant dense<0.000000e+00> : vector<16x16xf32>
    %9 = tpu.matmul %0, %8, %cst {dimension_numbers = #tpu.dot_dimension_numbers<[1], [0], [0], [1], [0, 0, 1, 1], [], []>, precision = #tpu.contract_precision<fp32>} : vector<16x16xf32>, vector<16x16xf32>, vector<16x16xf32> -> vector<16x16xf32>
    %10 = vector.extract_strided_slice %9 {offsets = [0, 0], sizes = [8, 16], strides = [1, 1]} : vector<16x16xf32> to vector<8x16xf32>
    %11 = vector.extract_strided_slice %9 {offsets = [8, 0], sizes = [8, 16], strides = [1, 1]} : vector<16x16xf32> to vector<8x16xf32>
    %cst_17 = arith.constant dense<0.000000e+00> : vector<8x8xf32>
    %12 = tpu.matmul %10, %1, %cst_17 {dimension_numbers = #tpu.dot_dimension_numbers<[1], [0], [0], [1], [0, 0, 1, 1], [], []>, precision = #tpu.contract_precision<fp32>} : vector<8x16xf32>, vector<16x8xf32>, vector<8x8xf32> -> vector<8x8xf32>
    %cst_18 = arith.constant dense<0.000000e+00> : vector<8x8xf32>
    %13 = tpu.matmul %11, %2, %cst_18 {dimension_numbers = #tpu.dot_dimension_numbers<[1], [0], [0], [1], [0, 0, 1, 1], [], []>, precision = #tpu.contract_precision<fp32>} : vector<8x16xf32>, vector<16x8xf32>, vector<8x8xf32> -> vector<8x8xf32>
    %14 = arith.subf %12, %13 : vector<8x8xf32>
    %cst_19 = arith.constant dense<0.000000e+00> : vector<8x8xf32>
    %15 = tpu.matmul %10, %2, %cst_19 {dimension_numbers = #tpu.dot_dimension_numbers<[1], [0], [0], [1], [0, 0, 1, 1], [], []>, precision = #tpu.contract_precision<fp32>} : vector<8x16xf32>, vector<16x8xf32>, vector<8x8xf32> -> vector<8x8xf32>
    %cst_20 = arith.constant dense<0.000000e+00> : vector<8x8xf32>
    %16 = tpu.matmul %11, %1, %cst_20 {dimension_numbers = #tpu.dot_dimension_numbers<[1], [0], [0], [1], [0, 0, 1, 1], [], []>, precision = #tpu.contract_precision<fp32>} : vector<8x16xf32>, vector<16x8xf32>, vector<8x8xf32> -> vector<8x8xf32>
    %17 = arith.addf %15, %16 : vector<8x8xf32>
    %18 = arith.mulf %14, %14 : vector<8x8xf32>
    %19 = arith.mulf %17, %17 : vector<8x8xf32>
    %20 = arith.addf %18, %19 : vector<8x8xf32>
    %21 = math.sqrt %20 : vector<8x8xf32>
    %22 = vector.extract_strided_slice %21 {offsets = [0, 0], sizes = [2, 2], strides = [1, 1]} : vector<8x8xf32> to vector<2x2xf32>
    %c0_21 = arith.constant 0 : index
    %c0_22 = arith.constant 0 : index
    %c0_23 = arith.constant 0 : index
    %c0_24 = arith.constant 0 : index
    %23 = vector.load %arg11[%c0_21, %c0_22, %c0_23, %c0_24] : memref<1x3x2x2xf32, #tpu.memory_space<vmem>>, vector<1x1x2x2xf32>
    %24 = vector.shape_cast %23 : vector<1x1x2x2xf32> to vector<2x2xf32>
    %25 = vector.shape_cast %22 : vector<2x2xf32> to vector<1x1x2x2xf32>
    tpu.vector_store %arg11[%c0_21, %c0_22, %c0_23, %c0_24], %25 {strides = array<i32>} : memref<1x3x2x2xf32, #tpu.memory_space<vmem>>, vector<1x1x2x2xf32>,
    %c0_25 = arith.constant 0 : index
    %c0_26 = arith.constant 0 : index
    %c0_27 = arith.constant 0 : index
    %26 = vector.load %arg9[%c0_25, %c0_26, %c0_27] : memref<3x8x8xf32, #tpu.memory_space<vmem>>, vector<1x8x8xf32>
    %27 = vector.shape_cast %26 : vector<1x8x8xf32> to vector<8x8xf32>
    %28 = arith.mulf %14, %27 : vector<8x8xf32>
    %29 = arith.mulf %17, %27 : vector<8x8xf32>
    %cst_28 = arith.constant dense<0.000000e+00> : vector<8x16xf32>
    %30 = tpu.matmul %28, %5, %cst_28 {dimension_numbers = #tpu.dot_dimension_numbers<[1], [0], [0], [1], [0, 0, 1, 1], [], []>, precision = #tpu.contract_precision<fp32>} : vector<8x8xf32>, vector<8x16xf32>, vector<8x16xf32> -> vector<8x16xf32>
    %cst_29 = arith.constant dense<0.000000e+00> : vector<8x16xf32>
    %31 = tpu.matmul %29, %6, %cst_29 {dimension_numbers = #tpu.dot_dimension_numbers<[1], [0], [0], [1], [0, 0, 1, 1], [], []>, precision = #tpu.contract_precision<fp32>} : vector<8x8xf32>, vector<8x16xf32>, vector<8x16xf32> -> vector<8x16xf32>
    %32 = arith.subf %30, %31 : vector<8x16xf32>
    %cst_30 = arith.constant dense<0.000000e+00> : vector<8x16xf32>
    %33 = tpu.matmul %29, %5, %cst_30 {dimension_numbers = #tpu.dot_dimension_numbers<[1], [0], [0], [1], [0, 0, 1, 1], [], []>, precision = #tpu.contract_precision<fp32>} : vector<8x8xf32>, vector<8x16xf32>, vector<8x16xf32> -> vector<8x16xf32>
    %cst_31 = arith.constant dense<0.000000e+00> : vector<8x16xf32>
    %34 = tpu.matmul %28, %6, %cst_31 {dimension_numbers = #tpu.dot_dimension_numbers<[1], [0], [0], [1], [0, 0, 1, 1], [], []>, precision = #tpu.contract_precision<fp32>} : vector<8x8xf32>, vector<8x16xf32>, vector<8x16xf32> -> vector<8x16xf32>
    %35 = arith.addf %33, %34 : vector<8x16xf32>
    %cst_32 = arith.constant 0.000000e+00 : f32
    %36 = vector.broadcast %cst_32 : f32 to vector<8x16xf32>
    %37 = arith.subf %36, %35 : vector<8x16xf32>
    %cst_33 = arith.constant dense<0.000000e+00> : vector<16x16xf32>
    %38 = tpu.matmul %3, %32, %cst_33 {dimension_numbers = #tpu.dot_dimension_numbers<[1], [0], [0], [1], [0, 0, 1, 1], [], []>, precision = #tpu.contract_precision<fp32>} : vector<16x8xf32>, vector<8x16xf32>, vector<16x16xf32> -> vector<16x16xf32>
    %39 = arith.addf %8, %38 : vector<16x16xf32>
    %cst_34 = arith.constant dense<0.000000e+00> : vector<16x16xf32>
    %40 = tpu.matmul %4, %37, %cst_34 {dimension_numbers = #tpu.dot_dimension_numbers<[1], [0], [0], [1], [0, 0, 1, 1], [], []>, precision = #tpu.contract_precision<fp32>} : vector<16x8xf32>, vector<8x16xf32>, vector<16x16xf32> -> vector<16x16xf32>
    %41 = arith.addf %39, %40 : vector<16x16xf32>
    %c0_35 = arith.constant 0 : index
    %c0_36 = arith.constant 0 : index
    %c0_37 = arith.constant 0 : index
    %c0_38 = arith.constant 0 : index
    %42 = vector.load %arg10[%c0_35, %c0_36, %c0_37, %c0_38] : memref<1x3x16x16xf32, #tpu.memory_space<vmem>>, vector<1x1x16x16xf32>
    %43 = vector.shape_cast %42 : vector<1x1x16x16xf32> to vector<16x16xf32>
    %44 = vector.shape_cast %41 : vector<16x16xf32> to vector<1x1x16x16xf32>
    tpu.vector_store %arg10[%c0_35, %c0_36, %c0_37, %c0_38], %44 {strides = array<i32>} : memref<1x3x16x16xf32, #tpu.memory_space<vmem>>, vector<1x1x16x16xf32>,
    %c0_39 = arith.constant 0 : index
    %c1 = arith.constant 1 : index
    %c0_40 = arith.constant 0 : index
    %c0_41 = arith.constant 0 : index
    %45 = vector.load %arg1[%c0_39, %c1, %c0_40, %c0_41] : memref<1x3x16x16xf32, #tpu.memory_space<vmem>>, vector<1x1x16x16xf32>
    %46 = vector.shape_cast %45 : vector<1x1x16x16xf32> to vector<16x16xf32>
    %cst_42 = arith.constant dense<0.000000e+00> : vector<16x16xf32>
    %47 = tpu.matmul %0, %46, %cst_42 {dimension_numbers = #tpu.dot_dimension_numbers<[1], [0], [0], [1], [0, 0, 1, 1], [], []>, precision = #tpu.contract_precision<fp32>} : vector<16x16xf32>, vector<16x16xf32>, vector<16x16xf32> -> vector<16x16xf32>
    %48 = vector.extract_strided_slice %47 {offsets = [0, 0], sizes = [8, 16], strides = [1, 1]} : vector<16x16xf32> to vector<8x16xf32>
    %49 = vector.extract_strided_slice %47 {offsets = [8, 0], sizes = [8, 16], strides = [1, 1]} : vector<16x16xf32> to vector<8x16xf32>
    %cst_43 = arith.constant dense<0.000000e+00> : vector<8x8xf32>
    %50 = tpu.matmul %48, %1, %cst_43 {dimension_numbers = #tpu.dot_dimension_numbers<[1], [0], [0], [1], [0, 0, 1, 1], [], []>, precision = #tpu.contract_precision<fp32>} : vector<8x16xf32>, vector<16x8xf32>, vector<8x8xf32> -> vector<8x8xf32>
    %cst_44 = arith.constant dense<0.000000e+00> : vector<8x8xf32>
    %51 = tpu.matmul %49, %2, %cst_44 {dimension_numbers = #tpu.dot_dimension_numbers<[1], [0], [0], [1], [0, 0, 1, 1], [], []>, precision = #tpu.contract_precision<fp32>} : vector<8x16xf32>, vector<16x8xf32>, vector<8x8xf32> -> vector<8x8xf32>
    %52 = arith.subf %50, %51 : vector<8x8xf32>
    %cst_45 = arith.constant dense<0.000000e+00> : vector<8x8xf32>
    %53 = tpu.matmul %48, %2, %cst_45 {dimension_numbers = #tpu.dot_dimension_numbers<[1], [0], [0], [1], [0, 0, 1, 1], [], []>, precision = #tpu.contract_precision<fp32>} : vector<8x16xf32>, vector<16x8xf32>, vector<8x8xf32> -> vector<8x8xf32>
    %cst_46 = arith.constant dense<0.000000e+00> : vector<8x8xf32>
    %54 = tpu.matmul %49, %1, %cst_46 {dimension_numbers = #tpu.dot_dimension_numbers<[1], [0], [0], [1], [0, 0, 1, 1], [], []>, precision = #tpu.contract_precision<fp32>} : vector<8x16xf32>, vector<16x8xf32>, vector<8x8xf32> -> vector<8x8xf32>
    %55 = arith.addf %53, %54 : vector<8x8xf32>
    %56 = arith.mulf %52, %52 : vector<8x8xf32>
    %57 = arith.mulf %55, %55 : vector<8x8xf32>
    %58 = arith.addf %56, %57 : vector<8x8xf32>
    %59 = math.sqrt %58 : vector<8x8xf32>
    %60 = vector.extract_strided_slice %59 {offsets = [0, 0], sizes = [2, 2], strides = [1, 1]} : vector<8x8xf32> to vector<2x2xf32>
    %c0_47 = arith.constant 0 : index
    %c1_48 = arith.constant 1 : index
    %c0_49 = arith.constant 0 : index
    %c0_50 = arith.constant 0 : index
    %61 = vector.load %arg11[%c0_47, %c1_48, %c0_49, %c0_50] : memref<1x3x2x2xf32, #tpu.memory_space<vmem>>, vector<1x1x2x2xf32>
    %62 = vector.shape_cast %61 : vector<1x1x2x2xf32> to vector<2x2xf32>
    %63 = vector.shape_cast %60 : vector<2x2xf32> to vector<1x1x2x2xf32>
    tpu.vector_store %arg11[%c0_47, %c1_48, %c0_49, %c0_50], %63 {strides = array<i32>} : memref<1x3x2x2xf32, #tpu.memory_space<vmem>>, vector<1x1x2x2xf32>,
    %c1_51 = arith.constant 1 : index
    %c0_52 = arith.constant 0 : index
    %c0_53 = arith.constant 0 : index
    %64 = vector.load %arg9[%c1_51, %c0_52, %c0_53] : memref<3x8x8xf32, #tpu.memory_space<vmem>>, vector<1x8x8xf32>
    %65 = vector.shape_cast %64 : vector<1x8x8xf32> to vector<8x8xf32>
    %66 = arith.mulf %52, %65 : vector<8x8xf32>
    %67 = arith.mulf %55, %65 : vector<8x8xf32>
    %cst_54 = arith.constant dense<0.000000e+00> : vector<8x16xf32>
    %68 = tpu.matmul %66, %5, %cst_54 {dimension_numbers = #tpu.dot_dimension_numbers<[1], [0], [0], [1], [0, 0, 1, 1], [], []>, precision = #tpu.contract_precision<fp32>} : vector<8x8xf32>, vector<8x16xf32>, vector<8x16xf32> -> vector<8x16xf32>
    %cst_55 = arith.constant dense<0.000000e+00> : vector<8x16xf32>
    %69 = tpu.matmul %67, %6, %cst_55 {dimension_numbers = #tpu.dot_dimension_numbers<[1], [0], [0], [1], [0, 0, 1, 1], [], []>, precision = #tpu.contract_precision<fp32>} : vector<8x8xf32>, vector<8x16xf32>, vector<8x16xf32> -> vector<8x16xf32>
    %70 = arith.subf %68, %69 : vector<8x16xf32>
    %cst_56 = arith.constant dense<0.000000e+00> : vector<8x16xf32>
    %71 = tpu.matmul %67, %5, %cst_56 {dimension_numbers = #tpu.dot_dimension_numbers<[1], [0], [0], [1], [0, 0, 1, 1], [], []>, precision = #tpu.contract_precision<fp32>} : vector<8x8xf32>, vector<8x16xf32>, vector<8x16xf32> -> vector<8x16xf32>
    %cst_57 = arith.constant dense<0.000000e+00> : vector<8x16xf32>
    %72 = tpu.matmul %66, %6, %cst_57 {dimension_numbers = #tpu.dot_dimension_numbers<[1], [0], [0], [1], [0, 0, 1, 1], [], []>, precision = #tpu.contract_precision<fp32>} : vector<8x8xf32>, vector<8x16xf32>, vector<8x16xf32> -> vector<8x16xf32>
    %73 = arith.addf %71, %72 : vector<8x16xf32>
    %cst_58 = arith.constant 0.000000e+00 : f32
    %74 = vector.broadcast %cst_58 : f32 to vector<8x16xf32>
    %75 = arith.subf %74, %73 : vector<8x16xf32>
    %cst_59 = arith.constant dense<0.000000e+00> : vector<16x16xf32>
    %76 = tpu.matmul %3, %70, %cst_59 {dimension_numbers = #tpu.dot_dimension_numbers<[1], [0], [0], [1], [0, 0, 1, 1], [], []>, precision = #tpu.contract_precision<fp32>} : vector<16x8xf32>, vector<8x16xf32>, vector<16x16xf32> -> vector<16x16xf32>
    %77 = arith.addf %46, %76 : vector<16x16xf32>
    %cst_60 = arith.constant dense<0.000000e+00> : vector<16x16xf32>
    %78 = tpu.matmul %4, %75, %cst_60 {dimension_numbers = #tpu.dot_dimension_numbers<[1], [0], [0], [1], [0, 0, 1, 1], [], []>, precision = #tpu.contract_precision<fp32>} : vector<16x8xf32>, vector<8x16xf32>, vector<16x16xf32> -> vector<16x16xf32>
    %79 = arith.addf %77, %78 : vector<16x16xf32>
    %c0_61 = arith.constant 0 : index
    %c1_62 = arith.constant 1 : index
    %c0_63 = arith.constant 0 : index
    %c0_64 = arith.constant 0 : index
    %80 = vector.load %arg10[%c0_61, %c1_62, %c0_63, %c0_64] : memref<1x3x16x16xf32, #tpu.memory_space<vmem>>, vector<1x1x16x16xf32>
    %81 = vector.shape_cast %80 : vector<1x1x16x16xf32> to vector<16x16xf32>
    %82 = vector.shape_cast %79 : vector<16x16xf32> to vector<1x1x16x16xf32>
    tpu.vector_store %arg10[%c0_61, %c1_62, %c0_63, %c0_64], %82 {strides = array<i32>} : memref<1x3x16x16xf32, #tpu.memory_space<vmem>>, vector<1x1x16x16xf32>,
    %c0_65 = arith.constant 0 : index
    %c2 = arith.constant 2 : index
    %c0_66 = arith.constant 0 : index
    %c0_67 = arith.constant 0 : index
    %83 = vector.load %arg1[%c0_65, %c2, %c0_66, %c0_67] : memref<1x3x16x16xf32, #tpu.memory_space<vmem>>, vector<1x1x16x16xf32>
    %84 = vector.shape_cast %83 : vector<1x1x16x16xf32> to vector<16x16xf32>
    %cst_68 = arith.constant dense<0.000000e+00> : vector<16x16xf32>
    %85 = tpu.matmul %0, %84, %cst_68 {dimension_numbers = #tpu.dot_dimension_numbers<[1], [0], [0], [1], [0, 0, 1, 1], [], []>, precision = #tpu.contract_precision<fp32>} : vector<16x16xf32>, vector<16x16xf32>, vector<16x16xf32> -> vector<16x16xf32>
    %86 = vector.extract_strided_slice %85 {offsets = [0, 0], sizes = [8, 16], strides = [1, 1]} : vector<16x16xf32> to vector<8x16xf32>
    %87 = vector.extract_strided_slice %85 {offsets = [8, 0], sizes = [8, 16], strides = [1, 1]} : vector<16x16xf32> to vector<8x16xf32>
    %cst_69 = arith.constant dense<0.000000e+00> : vector<8x8xf32>
    %88 = tpu.matmul %86, %1, %cst_69 {dimension_numbers = #tpu.dot_dimension_numbers<[1], [0], [0], [1], [0, 0, 1, 1], [], []>, precision = #tpu.contract_precision<fp32>} : vector<8x16xf32>, vector<16x8xf32>, vector<8x8xf32> -> vector<8x8xf32>
    %cst_70 = arith.constant dense<0.000000e+00> : vector<8x8xf32>
    %89 = tpu.matmul %87, %2, %cst_70 {dimension_numbers = #tpu.dot_dimension_numbers<[1], [0], [0], [1], [0, 0, 1, 1], [], []>, precision = #tpu.contract_precision<fp32>} : vector<8x16xf32>, vector<16x8xf32>, vector<8x8xf32> -> vector<8x8xf32>
    %90 = arith.subf %88, %89 : vector<8x8xf32>
    %cst_71 = arith.constant dense<0.000000e+00> : vector<8x8xf32>
    %91 = tpu.matmul %86, %2, %cst_71 {dimension_numbers = #tpu.dot_dimension_numbers<[1], [0], [0], [1], [0, 0, 1, 1], [], []>, precision = #tpu.contract_precision<fp32>} : vector<8x16xf32>, vector<16x8xf32>, vector<8x8xf32> -> vector<8x8xf32>
    %cst_72 = arith.constant dense<0.000000e+00> : vector<8x8xf32>
    %92 = tpu.matmul %87, %1, %cst_72 {dimension_numbers = #tpu.dot_dimension_numbers<[1], [0], [0], [1], [0, 0, 1, 1], [], []>, precision = #tpu.contract_precision<fp32>} : vector<8x16xf32>, vector<16x8xf32>, vector<8x8xf32> -> vector<8x8xf32>
    %93 = arith.addf %91, %92 : vector<8x8xf32>
    %94 = arith.mulf %90, %90 : vector<8x8xf32>
    %95 = arith.mulf %93, %93 : vector<8x8xf32>
    %96 = arith.addf %94, %95 : vector<8x8xf32>
    %97 = math.sqrt %96 : vector<8x8xf32>
    %98 = vector.extract_strided_slice %97 {offsets = [0, 0], sizes = [2, 2], strides = [1, 1]} : vector<8x8xf32> to vector<2x2xf32>
    %c0_73 = arith.constant 0 : index
    %c2_74 = arith.constant 2 : index
    %c0_75 = arith.constant 0 : index
    %c0_76 = arith.constant 0 : index
    %99 = vector.load %arg11[%c0_73, %c2_74, %c0_75, %c0_76] : memref<1x3x2x2xf32, #tpu.memory_space<vmem>>, vector<1x1x2x2xf32>
    %100 = vector.shape_cast %99 : vector<1x1x2x2xf32> to vector<2x2xf32>
    %101 = vector.shape_cast %98 : vector<2x2xf32> to vector<1x1x2x2xf32>
    tpu.vector_store %arg11[%c0_73, %c2_74, %c0_75, %c0_76], %101 {strides = array<i32>} : memref<1x3x2x2xf32, #tpu.memory_space<vmem>>, vector<1x1x2x2xf32>,
    %c2_77 = arith.constant 2 : index
    %c0_78 = arith.constant 0 : index
    %c0_79 = arith.constant 0 : index
    %102 = vector.load %arg9[%c2_77, %c0_78, %c0_79] : memref<3x8x8xf32, #tpu.memory_space<vmem>>, vector<1x8x8xf32>
    %103 = vector.shape_cast %102 : vector<1x8x8xf32> to vector<8x8xf32>
    %104 = arith.mulf %90, %103 : vector<8x8xf32>
    %105 = arith.mulf %93, %103 : vector<8x8xf32>
    %cst_80 = arith.constant dense<0.000000e+00> : vector<8x16xf32>
    %106 = tpu.matmul %104, %5, %cst_80 {dimension_numbers = #tpu.dot_dimension_numbers<[1], [0], [0], [1], [0, 0, 1, 1], [], []>, precision = #tpu.contract_precision<fp32>} : vector<8x8xf32>, vector<8x16xf32>, vector<8x16xf32> -> vector<8x16xf32>
    %cst_81 = arith.constant dense<0.000000e+00> : vector<8x16xf32>
    %107 = tpu.matmul %105, %6, %cst_81 {dimension_numbers = #tpu.dot_dimension_numbers<[1], [0], [0], [1], [0, 0, 1, 1], [], []>, precision = #tpu.contract_precision<fp32>} : vector<8x8xf32>, vector<8x16xf32>, vector<8x16xf32> -> vector<8x16xf32>
    %108 = arith.subf %106, %107 : vector<8x16xf32>
    %cst_82 = arith.constant dense<0.000000e+00> : vector<8x16xf32>
    %109 = tpu.matmul %105, %5, %cst_82 {dimension_numbers = #tpu.dot_dimension_numbers<[1], [0], [0], [1], [0, 0, 1, 1], [], []>, precision = #tpu.contract_precision<fp32>} : vector<8x8xf32>, vector<8x16xf32>, vector<8x16xf32> -> vector<8x16xf32>
    %cst_83 = arith.constant dense<0.000000e+00> : vector<8x16xf32>
    %110 = tpu.matmul %104, %6, %cst_83 {dimension_numbers = #tpu.dot_dimension_numbers<[1], [0], [0], [1], [0, 0, 1, 1], [], []>, precision = #tpu.contract_precision<fp32>} : vector<8x8xf32>, vector<8x16xf32>, vector<8x16xf32> -> vector<8x16xf32>
    %111 = arith.addf %109, %110 : vector<8x16xf32>
    %cst_84 = arith.constant 0.000000e+00 : f32
    %112 = vector.broadcast %cst_84 : f32 to vector<8x16xf32>
    %113 = arith.subf %112, %111 : vector<8x16xf32>
    %cst_85 = arith.constant dense<0.000000e+00> : vector<16x16xf32>
    %114 = tpu.matmul %3, %108, %cst_85 {dimension_numbers = #tpu.dot_dimension_numbers<[1], [0], [0], [1], [0, 0, 1, 1], [], []>, precision = #tpu.contract_precision<fp32>} : vector<16x8xf32>, vector<8x16xf32>, vector<16x16xf32> -> vector<16x16xf32>
    %115 = arith.addf %84, %114 : vector<16x16xf32>
    %cst_86 = arith.constant dense<0.000000e+00> : vector<16x16xf32>
    %116 = tpu.matmul %4, %113, %cst_86 {dimension_numbers = #tpu.dot_dimension_numbers<[1], [0], [0], [1], [0, 0, 1, 1], [], []>, precision = #tpu.contract_precision<fp32>} : vector<16x8xf32>, vector<8x16xf32>, vector<16x16xf32> -> vector<16x16xf32>
    %117 = arith.addf %115, %116 : vector<16x16xf32>
    %c0_87 = arith.constant 0 : index
    %c2_88 = arith.constant 2 : index
    %c0_89 = arith.constant 0 : index
    %c0_90 = arith.constant 0 : index
    %118 = vector.load %arg10[%c0_87, %c2_88, %c0_89, %c0_90] : memref<1x3x16x16xf32, #tpu.memory_space<vmem>>, vector<1x1x16x16xf32>
    %119 = vector.shape_cast %118 : vector<1x1x16x16xf32> to vector<16x16xf32>
    %120 = vector.shape_cast %117 : vector<16x16xf32> to vector<1x1x16x16xf32>
    tpu.vector_store %arg10[%c0_87, %c2_88, %c0_89, %c0_90], %120 {strides = array<i32>} : memref<1x3x16x16xf32, #tpu.memory_space<vmem>>, vector<1x1x16x16xf32>,
    return
  }
  func.func @transform_0(%arg0: i32) -> (i32, i32, i32, i32) {
    %c0_i32 = arith.constant 0 : i32
    %c0_i32_0 = arith.constant 0 : i32
    %c0_i32_1 = arith.constant 0 : i32
    %c0_i32_2 = arith.constant 0 : i32
    return %arg0, %c0_i32, %c0_i32_0, %c0_i32_1 : i32, i32, i32, i32
  }
  func.func @transform_1(%arg0: i32) -> (i32, i32) {
    %c0_i32 = arith.constant 0 : i32
    %c0_i32_0 = arith.constant 0 : i32
    %c0_i32_1 = arith.constant 0 : i32
    return %c0_i32, %c0_i32_0 : i32, i32
  }
  func.func @transform_2(%arg0: i32) -> (i32, i32) {
    %c0_i32 = arith.constant 0 : i32
    %c0_i32_0 = arith.constant 0 : i32
    %c0_i32_1 = arith.constant 0 : i32
    return %c0_i32, %c0_i32_0 : i32, i32
  }
  func.func @transform_3(%arg0: i32) -> (i32, i32) {
    %c0_i32 = arith.constant 0 : i32
    %c0_i32_0 = arith.constant 0 : i32
    %c0_i32_1 = arith.constant 0 : i32
    return %c0_i32, %c0_i32_0 : i32, i32
  }
  func.func @transform_4(%arg0: i32) -> (i32, i32) {
    %c0_i32 = arith.constant 0 : i32
    %c0_i32_0 = arith.constant 0 : i32
    %c0_i32_1 = arith.constant 0 : i32
    return %c0_i32, %c0_i32_0 : i32, i32
  }
  func.func @transform_5(%arg0: i32) -> (i32, i32) {
    %c0_i32 = arith.constant 0 : i32
    %c0_i32_0 = arith.constant 0 : i32
    %c0_i32_1 = arith.constant 0 : i32
    return %c0_i32, %c0_i32_0 : i32, i32
  }
  func.func @transform_6(%arg0: i32) -> (i32, i32) {
    %c0_i32 = arith.constant 0 : i32
    %c0_i32_0 = arith.constant 0 : i32
    %c0_i32_1 = arith.constant 0 : i32
    return %c0_i32, %c0_i32_0 : i32, i32
  }
  func.func @transform_7(%arg0: i32) -> (i32, i32) {
    %c0_i32 = arith.constant 0 : i32
    %c0_i32_0 = arith.constant 0 : i32
    %c0_i32_1 = arith.constant 0 : i32
    return %c0_i32, %c0_i32_0 : i32, i32
  }
  func.func @transform_8(%arg0: i32) -> (i32, i32, i32) {
    %c0_i32 = arith.constant 0 : i32
    %c0_i32_0 = arith.constant 0 : i32
    %c0_i32_1 = arith.constant 0 : i32
    %c0_i32_2 = arith.constant 0 : i32
    return %c0_i32, %c0_i32_0, %c0_i32_1 : i32, i32, i32
  }
  func.func @transform_9(%arg0: i32) -> (i32, i32, i32, i32) {
    %c0_i32 = arith.constant 0 : i32
    %c0_i32_0 = arith.constant 0 : i32
    %c0_i32_1 = arith.constant 0 : i32
    %c0_i32_2 = arith.constant 0 : i32
    return %arg0, %c0_i32, %c0_i32_0, %c0_i32_1 : i32, i32, i32, i32
  }
  func.func @transform_10(%arg0: i32) -> (i32, i32, i32, i32) {
    %c0_i32 = arith.constant 0 : i32
    %c0_i32_0 = arith.constant 0 : i32
    %c0_i32_1 = arith.constant 0 : i32
    %c0_i32_2 = arith.constant 0 : i32
    return %arg0, %c0_i32, %c0_i32_0, %c0_i32_1 : i32, i32, i32, i32
  }
}

</mosaic_0001>

<bundles_post_ra>
// kernel: tpu_custom_call.1
= control target key start
LH: loop header
LB: loop body
LE: loop exit
PB: predicated region body
PF: predicated region fallthrough
CT: control target
= control target key end

     0   :  { %16 = vsyncpa [#allocation3], 0  ;;  %s19797_s0 = inlined_call_operand.hbm [shape: f32[2,3,16,16], index: 0, kind: input, shape index: {}]   ;;  %s19798_s1 = inlined_call_operand.vmem [shape: f32[16,16], index: 1, kind: input, shape index: {}]   ;;  %s19799_s2 = inlined_call_operand.vmem [shape: f32[16,8], index: 2, kind: input, shape index: {}]   ;;  %s19800_s3 = inlined_call_operand.vmem [shape: f32[16,8], index: 3, kind: input, shape index: {}]   ;;  %s19801_s4 = inlined_call_operand.vmem [shape: f32[16,8], index: 4, kind: input, shape index: {}]   ;;  %s19802_s5 = inlined_call_operand.vmem [shape: f32[16,8], index: 5, kind: input, shape index: {}]   ;;  %s19803_s6 = inlined_call_operand.vmem [shape: f32[8,16], index: 6, kind: input, shape index: {}]   ;;  %s19804_s7 = inlined_call_operand.vmem [shape: f32[8,16], index: 7, kind: input, shape index: {}]   ;;  %s19805_s8 = inlined_call_operand.vmem [shape: f32[3,8,8], index: 8, kind: input, shape index: {}]   ;;  %s19806_s9 = inlined_call_operand.hbm [shape: f32[2,3,16,16], index: 9, kind: output, shape index: {0}]   ;;  %s19807_s10 = inlined_call_operand.vmem [shape: f32[2,3,2,2], index: 10, kind: output, shape index: {1}]  }
   0x1   :  { %18 = vsyncpa [#allocation3 + $0x1], 0 }
   0x2   :  { %19 = vsyncpa [#allocation4], 0 }
   0x3   :  { %21 = vsyncpa [#allocation4 + $0x1], 0  ;;  %s18566_s13 = smov 0   ;;  %s18568_s14 = smov 0  }
   0x4   :  { %s18570_s15 = smov 0   ;;  %s18572_s16 = smov 0  }
   0x5 LB: > { %19812 = sst [smem:[#allocation8_spill]] %s18496_s15  ;;  %s18587_s17 = sadd.s32 4294967295, %s18500_s16   ;;  %s18500_s16 = sphi %s18572_s16, %s19822_s16   ;;  %s18496_s15 = sphi %s18570_s15, %s19824_s15   ;;  %s18492_s14 = sphi %s18568_s14, %s19826_s14   ;;  %s18488_s13 = sphi %s18566_s13, %s19825_s13  }
   0x6   : > { %s15963_s18 = sadd.s32 4294967294, %s18500_s16   ;;  %s18591_s19 = sadd.s32 1, %s18500_s16  }
   0x7   : > { %19813 = sst [smem:[#allocation9_spill]] %s18591_s19  ;;  %s34_s20 = sadd.s32 1, %s18496_s15 }
   0x8   : > { %s31_s21 = ssub.s32 %s18500_s16, %s18591_s19  ;;  %p41_p0 = scmp.ne.s32.totalorder %s18496_s15, %s18492_s14 }
   0x9   : > { %p32_p1 = scmp.eq.s32.totalorder %s31_s21, 0  ;;  %p42_p2 = scmp.eq.s32.totalorder %s18500_s16, 0 }
   0xa   : > { %p47_p3 = scmp.ne.s32.totalorder %s18492_s14, %s18488_s13  ;;  %p48_p4 = scmp.eq.s32.totalorder %s18587_s17, 0 }
   0xb   : > { %s18603_s22 = scalar_select %p32_p1, %s18496_s15, %s34_s20  }
   0xc   : > { %p43_p5 = por %p42_p2, %p41_p0  ;;  %p18605_p6 = por %p48_p4, %p47_p3 }
   0xd   : > { %19814 = sst [smem:[#allocation10_spill]] %s18603_s22  ;;  %p239_p7 = scmp.eq.s32.totalorder %s18587_s17, 1 }
   0xe   : > { %p245_p8 = scmp.eq.s32.totalorder %s15963_s18, 1  ;;  %p18353_p10 = scmp.lt.s32.totalorder %s18500_s16, 2 }
   0xf   : > { %p18612_p11 = por %p239_p7, %p41_p0  ;;  %s315_s26 = sand.u32 1, %s18496_s15  }
  0x10   : > { %p18616_p12 = por %p245_p8, %p47_p3  ;;  %s18337_s27 = smul.u32 768, %s18500_s16 }
  0x11   : > { %s19816_s24 = scalar_select %p18612_p11, 1, 0 }
  0x12   : > { %s19817_s25 = scalar_select %p18616_p12, 1, 0 }
  0x13   : > { %s18336_s28 = smul.u32 48, %s315_s26  ;;  %s18625_s11 = scalar_lea.hbm %s19797_s0, %s18337_s27 }
  0x14   : > { %p18627_p13 = pnand %p18353_p10, %p43_p5  ;;  %s18633_s21 = scalar_lea.sflag [#allocation3], %s315_s26 }
  0x15   : > { %s319_s18 = scalar_lea.vmem [#allocation2], %s18336_s28  ;;  %s18404_s22 = scalar_lea.hbm %s18625_s11, 768 }
  0x16   : > { %s326_s20 = sshll.u32 %s319_s18, 4  ;;  %p18405_p0 = scmp.ne.s32.totalorder %s18625_s11, %s18404_s22  ;;  %s18631_s20 = int_to_ptr.vmem [resolvable:$true] %s326_s20 }
  0x17   : > { %p18406_p1 = pneg %p18627_p13  ;;  %s18409_s30 = scalar_lea.hbm %s19797_s0, 1536 }
  0x18   : > { %p18410_p4 = scmp.lt.u32.totalorder %s18625_s11, %s19797_s0  ;;  %p18411_p5 = scmp.lt.u32.totalorder %s18409_s30, %s18404_s22 }
  0x19   : > { %p18407_p2 = pnand %p18406_p1, %p18405_p0  ;;  %p18413_p8 = scmp.lt.u32.totalorder %s18404_s22, %s18625_s11 }
  0x1a   : > { %p18412_p7 = por %p18411_p5, %p18410_p4 }
  0x1b   : > { %p18408_p3 = pneg %p18407_p2 }
  0x1c   : > { %p18414_p10 = por %p18413_p8, %p18412_p7 }
  0x1e   : > { %p18415_p9 = pnand %p18414_p10, %p18408_p3 }
  0x20   : > { %18418 = shalt.err (!%p18415_p9)
}
  0x21   : > { %s18419_s26 = scalar_lea.vmem %s18631_s20, 768  ;;  %s18502_s28 = smov [#allocation2]  }
  0x22   : > { %p18420_p0 = scmp.ne.s32.totalorder %s18631_s20, %s18419_s26  ;;  %s18424_s18 = sshll.u32 %s18502_s28, 4  ;;  %s18425_s18 = int_to_ptr.vmem [resolvable:$false] %s18424_s18 }
  0x23   : > { %s18426_s15 = scalar_lea.vmem %s18425_s18, 1536  ;;  %p18427_p11 = scmp.lt.s32.totalorder %s18631_s20, %s18425_s18 }
  0x24   : > { %p18422_p2 = pnand %p18420_p0, %p18406_p1  ;;  %p18428_p4 = scmp.lt.s32.totalorder %s18426_s15, %s18419_s26 }
  0x26   : > { %p18423_p12 = pneg %p18422_p2  ;;  %p18429_p5 = por %p18428_p4, %p18427_p11 }
  0x28   : > { %p18430_p7 = pnand %p18429_p5, %p18423_p12 }
  0x2a   : > { %18433 = shalt.err (!%p18430_p7)
}
  0x2b   : > { %s18503_s19 = smov 128   ;;  %s18504_s22 = smov 8  }
  0x2c   : > { %18348 = dma.hbm_to_vmem [thread:$0]  (!%p18627_p13), %s18625_s11, 768, %s18631_s20, %s18633_s21, %s18503_s19, %s18503_s19, %s18504_s22  }
  0x2d   : > { %p15967_p9 = scmp.ge.s32.totalorder %s18500_s16, 1  ;;  %p334_p1 = scmp.lt.s32.totalorder %s18500_s16, 3 }
  0x2f   : > { %p335_p3 = pnand %p15967_p9, %p334_p1 }
  0x30   : > { %s18664_s27 = sand.u32 (!%p335_p3), 1, %s18492_s14  }
  0x31   : > { %338 = sbr.rel (%p335_p3) target bundleno = 2660 (0xa64), region = 56  ;;  %s341_s30 = scalar_lea.sflag (!%p335_p3), [#allocation3], %s18664_s27 }
  0x32   : > { %s18338_s29 = smul.u32 (!%p335_p3), 48, %s18664_s27 }
  0x34   : > { %s18670_s26 = scalar_lea.vmem (!%p335_p3), [#allocation2], %s18338_s29 }
  0x38   : > { %18479 = dma.done.wait (%p18605_p6), %s341_s30, 768  }
  0x39   : > { %18481 = vsyncadd (%p18605_p6), %s341_s30, 4294966528  ;;  %vm405_vm0 = vcmask 130048   ;;  %v403_v0 = vld [vmem:[%s18670_s26] sm:$0xff]  ;;  %v404_v1 = vld [vmem:[%s18670_s26 + $0x8] sm:$0xff]  ;;  %v18505_v39 = vmov 0.0|0.0   ;;  %vm18506_vm1 = vmmov 0  }
  0x3a   : > { %v391_v2 = vld [vmem:[%s19798_s1] sm:$0xff]  ;;  %v413_v3 = vand.u32 4294901760, %v403_v0  ;;  %v416_v4 = vand.u32 4294901760, %v404_v1  ;;  %v392_v6 = vld [vmem:[%s19798_s1 + $0x8] sm:$0xff]  ;;  %v18507_v43 = vmov 0.0   ;;  %vm2772_vm2 = vcmask 64512  }
  0x3b   : > { %v407_v5 = vsel %vm405_vm0, %v391_v2, 0  ;;  %v410_v8 = vsel %vm405_vm0, %v392_v6, 0  ;;  %v395_v30 = vld [vmem:[%s19800_s3] sm:$0xff]  ;;  %v396_v31 = vld [vmem:[%s19800_s3 + $0x8] sm:$0xff]  ;;  %p386_p6 = scmp.lt.s32.totalorder %s18587_s17, 1  ;;  %vm2767_vm4 = vcmask 9216  }
  0x3c   : > { %v18685_v7 = vand.u32 4294901760, %v407_v5  ;;  %v17694_v9 = vpack.c.bf16 %v416_v4, %v413_v3  ;;  %v18688_v10 = vand.u32 4294901760, %v410_v8  ;;  %v501_v11 = vsub.f32 %v403_v0, %v413_v3  ;;  %v393_v34 = vld [vmem:[%s19799_s2] sm:$0xff]  ;;  %v394_v35 = vld [vmem:[%s19799_s2 + $0x8] sm:$0xff]  ;;  %s19311_s22 = scalar_lea.vmem [#allocation5], %s18338_s29  ;;  %p19819_p12 = scmp.ne.s32.totalorder %s19816_s24, 0 }
  0x3d   : > { %v508_v12 = vsub.f32 %v404_v1, %v416_v4  ;;  %v1380_v32 = vand.u32 4294901760, %v395_v30  ;;  %v1383_v33 = vand.u32 4294901760, %v396_v31  ;;  %v918_v36 = vand.u32 4294901760, %v393_v34  ;;  %s387_s15 = scalar_select %p386_p6, %s18587_s17, 1 }
  0x3e   : > { %v18691_v13 = vsub.f32 %v407_v5, %v18685_v7  ;;  %17707 = vmatprep.subr.bf16.mxu0 %v17694_v9  ;;  %17695 = vmatprep.subr.bf16.mxu1 %v17694_v9  ;;  %v18694_v14 = vsub.f32 %v410_v8, %v18688_v10  ;;  %v502_v15 = vand.u32 4294901760, %v501_v11  ;;  %v921_v37 = vand.u32 4294901760, %v394_v35 }
  0x3f   : > { %v509_v16 = vand.u32 4294901760, %v508_v12  ;;  %17709 = vmatpush3.bf16.msra.mxu0 %v17694_v9  ;;  %17697 = vmatpush3.bf16.msra.mxu1 %v17694_v9  ;;  %v17702_v29 = vpack.c.bf16 %v508_v12, %v501_v11  ;;  %v18734_v38 = vpack.c.bf16 %v1383_v33, %v1380_v32  ;;  %v1458_v41 = vsub.f32 %v395_v30, %v1380_v32  ;;  %v18909_v32 = vld [vmem:[%s19805_s8] sm:$0xff]  ;;  %s18339_s19 = smul.u32 6, %s387_s15  ;;  %s18508_s15 = smov [#allocation5]  }
  0x40   : > { %v18697_v17 = vand.u32 4294901760, %v18691_v13  ;;  %v18700_v18 = vand.u32 4294901760, %v18694_v14  ;;  %v503_v20 = vsub.f32 %v501_v11, %v502_v15  ;;  %v18738_v40 = vpack.c.bf16 %v921_v37, %v918_v36 }
  0x41   : > { %v17710_v19 = vpack.c.bf16 %v509_v16, %v502_v15  ;;  %v510_v21 = vsub.f32 %v508_v12, %v509_v16  ;;  %v1465_v42 = vsub.f32 %v396_v31, %v1383_v33  ;;  %v996_v44 = vsub.f32 %v393_v34, %v918_v36  ;;  %s19002_s11 = scalar_lea.vmem %s19807_s10, %s18339_s19  ;;  %s18438_s19 = sshll.u32 %s18508_s15, 4  ;;  %s18439_s19 = int_to_ptr.vmem [resolvable:$false] %s18438_s19 }
  0x42   : > { %16549 = vmatprep.mubr.f32.mxu0 %v18697_v17  ;;  %v482_v22 = vsub.f32 %v18691_v13, %v18697_v17  ;;  %v492_v23 = vsub.f32 %v18694_v14, %v18700_v18  ;;  %v504_v24 = vand.u32 4294901760, %v503_v20  ;;  %v1003_v45 = vsub.f32 %v394_v35, %v921_v37  ;;  %s18440_s30 = scalar_lea.vmem %s18439_s19, 1536 }
  0x43   : > { %16550 = vmatmul.mubr.f32.vlgmr.msra.gmra.mrb[0].mxu0 %v18700_v18  ;;  %17711 = vmatprep.subr.bf16.mxu0 %v17710_v19  ;;  %v511_v25 = vand.u32 4294901760, %v510_v21  ;;  %v1459_v46 = vand.u32 4294901760, %v1458_v41  ;;  %v1466_v47 = vand.u32 4294901760, %v1465_v42  ;;  %v997_v48 = vand.u32 4294901760, %v996_v44 }
  0x44   : > { %v18708_v26 = vand.u32 4294901760, %v482_v22  ;;  %17713 = vmatpush3.bf16.msra.mxu0 %v17710_v19  ;;  %16556 = vmatprep.mubr.f32.mxu0 %v18685_v7  ;;  %v18711_v27 = vand.u32 4294901760, %v492_v23  ;;  %v1004_v49 = vand.u32 4294901760, %v1003_v45  ;;  %v18752_v60 = vpack.c.bf16 %v1465_v42, %v1458_v41 }
  0x45   : > { %v17698_v28 = vpack.c.bf16 %v511_v25, %v504_v24  ;;  %17715 = vmatprep.subr.bf16.mxu0 %v17694_v9  ;;  %v1460_v50 = vsub.f32 %v1458_v41, %v1459_v46  ;;  %v1467_v51 = vsub.f32 %v1465_v42, %v1466_v47  ;;  %v998_v52 = vsub.f32 %v996_v44, %v997_v48  ;;  %v401_v24 = vld [vmem:[%s19803_s6] sm:$0xff] }
  0x46   : > { %16528 = vmatprep.mubr.f32.mxu1 %v18708_v26  ;;  %v1005_v53 = vsub.f32 %v1003_v45, %v1004_v49  ;;  %v18754_v61 = vpack.c.bf16 %v1003_v45, %v996_v44  ;;  %v18756_v62 = vpack.c.bf16 %v1466_v47, %v1459_v46  ;;  %v18758_v63 = vpack.c.bf16 %v1004_v49, %v997_v48  ;;  %v402_v25 = vld [vmem:[%s19804_s7] sm:$0xff] }
  0x47   : > { %16529 = vmatmul.mubr.f32.vlgmr.msra.gmra.mrb[0].mxu1 %v18711_v27  ;;  %17699 = vmatprep.subr.bf16.mxu1 %v17698_v28  ;;  %v1461_v54 = vand.u32 4294901760, %v1460_v50  ;;  %v1468_v55 = vand.u32 4294901760, %v1467_v51  ;;  %v999_v56 = vand.u32 4294901760, %v998_v52 }
  0x48   : > { %17701 = vmatpush3.bf16.msra.mxu1 %v17698_v28  ;;  %16535 = vmatprep.mubr.f32.mxu1 %v18685_v7  ;;  %v1006_v57 = vand.u32 4294901760, %v1005_v53  ;;  %v18896_v28 = vand.u32 4294901760, %v401_v24 }
  0x49   : > { %17703 = vmatprep.subr.bf16.mxu1 %v17702_v29  ;;  %v18748_v58 = vpack.c.bf16 %v1468_v55, %v1461_v54 }
  0x4a   : > { %v18750_v59 = vpack.c.bf16 %v1006_v57, %v999_v56  ;;  %v18914_v36 = vsub.f32 %v401_v24, %v18896_v28 }
  0x4b   : > { %16557 = vmatmul.mubr.f32.vlgmr.msra.gmra.mrb[0].mxu0 %v18688_v10 }
  0x4c   : > { %17717 = vmatpush3.bf16.msra.mxu0 %v17694_v9  ;;  %16563 = vmatprep.mubr.f32.mxu0 %v18685_v7  ;;  %v18923_v44 = vand.u32 4294901760, %v18914_v36 }
  0x4d   : > { %17736 = vmatprep.subr.bf16.mxu0 %v18505_v39 }
  0x4e   : > { %v2856_v48 = vsub.f32 %v18914_v36, %v18923_v44 }
  0x4f   : > { %16536 = vmatmul.mubr.f32.vlgmr.msra.gmra.mrb[0].mxu1 %v18688_v10 }
  0x50   : > { %17705 = vmatpush3.bf16.msra.mxu1 %v17702_v29  ;;  %16542 = vmatprep.mubr.f32.mxu1 %v18691_v13  ;;  %v18898_v29 = vand.u32 4294901760, %v402_v25  ;;  %v18932_v52 = vand.u32 4294901760, %v2856_v48  ;;  %v397_v48 = vld [vmem:[%s19801_s4] sm:$0xff] }
  0x51   : > { %17718 = vmatprep.subr.bf16.mxu1 %v18505_v39 }
  0x52   : > { %v18917_v37 = vsub.f32 %v402_v25, %v18898_v29 }
  0x53   : > { %16564 = vmatmul.mubr.f32.vlgmr.msra.gmra.mrb[0].mxu0 %v18688_v10 }
  0x54   : > { %17738 = vmatpush3.bf16.msra.mxu0 %v18734_v38  ;;  %16612 = vmatprep.mubr.msk.f32.mxu0 %vm18506_vm1, %v18507_v43  ;;  %v18926_v46 = vand.u32 4294901760, %v18917_v37 }
  0x55   : > { %17739 = vmatprep.subr.bf16.mxu0 %v18505_v39 }
  0x56   : > { %v3305_v50 = vsub.f32 %v18917_v37, %v18926_v46 }
  0x57   : > { %16543 = vmatmul.mubr.f32.vlgmr.msra.gmra.mrb[0].mxu1 %v18694_v14 }
  0x58   : > { %17720 = vmatpush3.bf16.msra.mxu1 %v18738_v40  ;;  %16570 = vmatprep.mubr.msk.f32.mxu1 %vm18506_vm1, %v18507_v43  ;;  %v18934_v54 = vand.u32 4294901760, %v3305_v50 }
  0x59   : > { %17721 = vmatprep.subr.bf16.mxu1 %v18505_v39 }
 0x126   : > { %v16565_v0 = vpop.f32.mrb[0].mxu0 }
 0x127   : > { %v904_v1 = vpop.f32.mrb[1].mxu0 }
 0x12a   : > { %v16544_v2 = vpop.f32.mrb[0].mxu1 }
 0x12b   : > { %v17982_v3 = vadd.f32 %v16565_v0, %v16544_v2  ;;  %v658_v4 = vpop.f32.mrb[1].mxu1 }
 0x12c   : > { %v17983_v5 = vadd.f32 %v904_v1, %v658_v4 }
 0x12d   : > { %v1377_v6 = vsel %vm405_vm0, %v17982_v3, 0 }
 0x12e   : > { %v18761_v8 = vand.u32 4294901760, %v1377_v6  ;;  %v915_v9 = vsel %vm405_vm0, %v17983_v5, 0 }
 0x12f   : > { %v18764_v11 = vand.u32 4294901760, %v915_v9 }
 0x130   : > { %v1447_v12 = vsub.f32 %v1377_v6, %v18761_v8 }
 0x131   : > { %v18768_v15 = vsub.f32 %v915_v9, %v18764_v11 }
 0x132   : > { %v18770_v16 = vand.u32 4294901760, %v1447_v12 }
 0x133   : > { %v18773_v19 = vand.u32 4294901760, %v18768_v15 }
 0x134   : > { %v1449_v20 = vsub.f32 %v1447_v12, %v18770_v16 }
 0x135   : > { %v987_v21 = vsub.f32 %v18768_v15, %v18773_v19 }
 0x136   : > { %v1450_v22 = vand.u32 4294901760, %v1449_v20  ;;  %v15969_v20 = vld [vmem:[%s18670_s26 + $0x10] sm:$0xff] }
 0x137   : > { %v18778_v23 = vand.u32 4294901760, %v987_v21  ;;  %v15970_v21 = vld [vmem:[%s18670_s26 + $0x18] sm:$0xff] }
 0x138   : > { %16613 = vmatmul.mubr.f32.vlgmr.msra.gmra.mrb[2].mxu0 %v1450_v22 }
 0x139   : > { %16571 = vmatmul.mubr.f32.vlgmr.msra.gmra.mrb[2].mxu1 %v18778_v23  ;;  %17741 = vmatpush3.bf16.msra.mxu0 %v18748_v58 }
 0x13a   : > { %17723 = vmatpush3.bf16.msra.mxu1 %v18750_v59  ;;  %16619 = vmatprep.mubr.msk.f32.mxu0 %vm18506_vm1, %v18507_v43 }
 0x13b   : > { %16577 = vmatprep.mubr.msk.f32.mxu1 %vm18506_vm1, %v18507_v43  ;;  %17742 = vmatprep.subr.bf16.mxu0 %v18505_v39 }
 0x13c   : > { %17724 = vmatprep.subr.bf16.mxu1 %v18505_v39 }
 0x140   : > { %16620 = vmatmul.mubr.f32.vlgmr.msra.gmra.mrb[2].mxu0 %v18761_v8 }
 0x141   : > { %16578 = vmatmul.mubr.f32.vlgmr.msra.gmra.mrb[2].mxu1 %v18764_v11  ;;  %17744 = vmatpush3.bf16.msra.mxu0 %v18752_v60 }
 0x142   : > { %17726 = vmatpush3.bf16.msra.mxu1 %v18754_v61  ;;  %16626 = vmatprep.mubr.msk.f32.mxu0 %vm18506_vm1, %v18507_v43 }
 0x143   : > { %16584 = vmatprep.mubr.msk.f32.mxu1 %vm18506_vm1, %v18507_v43  ;;  %17745 = vmatprep.subr.bf16.mxu0 %v18505_v39 }
 0x144   : > { %17727 = vmatprep.subr.bf16.mxu1 %v18505_v39 }
 0x148   : > { %16627 = vmatmul.mubr.f32.vlgmr.msra.gmra.mrb[2].mxu0 %v1447_v12 }
 0x149   : > { %16585 = vmatmul.mubr.f32.vlgmr.msra.gmra.mrb[2].mxu1 %v18768_v15  ;;  %17747 = vmatpush3.bf16.msra.mxu0 %v18734_v38 }
 0x14a   : > { %17729 = vmatpush3.bf16.msra.mxu1 %v18738_v40  ;;  %16633 = vmatprep.mubr.msk.f32.mxu0 %vm18506_vm1, %v18507_v43 }
 0x14b   : > { %16591 = vmatprep.mubr.msk.f32.mxu1 %vm18506_vm1, %v18507_v43  ;;  %17748 = vmatprep.subr.bf16.mxu0 %v18505_v39 }
 0x14c   : > { %17730 = vmatprep.subr.bf16.mxu1 %v18505_v39 }
 0x150   : > { %16634 = vmatmul.mubr.f32.vlgmr.msra.gmra.mrb[2].mxu0 %v18770_v16 }
 0x151   : > { %16592 = vmatmul.mubr.f32.vlgmr.msra.gmra.mrb[2].mxu1 %v18773_v19  ;;  %17750 = vmatpush3.bf16.msra.mxu0 %v18756_v62 }
 0x152   : > { %17732 = vmatpush3.bf16.msra.mxu1 %v18758_v63  ;;  %16640 = vmatprep.mubr.msk.f32.mxu0 %vm18506_vm1, %v18507_v43 }
 0x153   : > { %16598 = vmatprep.mubr.msk.f32.mxu1 %vm18506_vm1, %v18507_v43  ;;  %17751 = vmatprep.subr.bf16.mxu0 %v18505_v39 }
 0x154   : > { %17733 = vmatprep.subr.bf16.mxu1 %v18505_v39 }
 0x158   : > { %16641 = vmatmul.mubr.f32.vlgmr.msra.gmra.mrb[2].mxu0 %v18761_v8 }
 0x159   : > { %16599 = vmatmul.mubr.f32.vlgmr.msra.gmra.mrb[2].mxu1 %v18764_v11  ;;  %17753 = vmatpush3.bf16.msra.mxu0 %v18734_v38 }
 0x15a   : > { %17735 = vmatpush3.bf16.msra.mxu1 %v18738_v40  ;;  %16647 = vmatprep.mubr.msk.f32.mxu0 %vm18506_vm1, %v18507_v43 }
 0x15b   : > { %16605 = vmatprep.mubr.msk.f32.mxu1 %vm18506_vm1, %v18507_v43  ;;  %17754 = vmatprep.subr.bf16.mxu1 %v18505_v39 }
 0x15c   : > { %16734 = vmatprep.subr.mxu0 %v18507_v43 }
 0x160   : > { %16648 = vmatmul.mubr.f32.vlgmr.msra.gmra.mrb[2].mxu0 %v18761_v8 }
 0x161   : > { %16606 = vmatmul.mubr.f32.vlgmr.msra.gmra.mrb[2].mxu1 %v18764_v11  ;;  %16736 = vmatprep.mubr.msk.f32.mxu0 %vm18506_vm1, %v18507_v43 }
 0x162   : > { %17756 = vmatpush3.bf16.msra.mxu1 %v18738_v40  ;;  %16654 = vmatprep.mubr.msk.f32.mxu1 %vm18506_vm1, %v18507_v43 }
 0x163   : > { %17757 = vmatprep.subr.bf16.mxu1 %v18505_v39  ;;  %16735 = vmatpush3.msra.mxu0 %v18896_v28 }
 0x164   : > { %16739 = vmatprep.subr.mxu0 %v18507_v43 }
 0x165   : > { %16655 = vmatmul.mubr.f32.vlgmr.msra.gmra.mrb[4].mxu1 %v1450_v22  ;;  %v5565_v22 = vand.u32 4294901760, %v15969_v20 }
 0x166   : > { %17759 = vmatpush3.bf16.msra.mxu1 %v18750_v59  ;;  %16661 = vmatprep.mubr.msk.f32.mxu1 %vm18506_vm1, %v18507_v43 }
 0x167   : > { %17760 = vmatprep.subr.bf16.mxu1 %v18505_v39  ;;  %v5653_v24 = vsub.f32 %v15969_v20, %v5565_v22 }
 0x16d   : > { %16662 = vmatmul.mubr.f32.vlgmr.msra.gmra.mrb[4].mxu1 %v18761_v8 }
 0x16e   : > { %17762 = vmatpush3.bf16.msra.mxu1 %v18754_v61  ;;  %16668 = vmatprep.mubr.msk.f32.mxu1 %vm18506_vm1, %v18507_v43 }
 0x16f   : > { %17763 = vmatprep.subr.bf16.mxu1 %v18505_v39 }
 0x175   : > { %16669 = vmatmul.mubr.f32.vlgmr.msra.gmra.mrb[4].mxu1 %v1447_v12 }
 0x176   : > { %17765 = vmatpush3.bf16.msra.mxu1 %v18738_v40  ;;  %16675 = vmatprep.mubr.msk.f32.mxu1 %vm18506_vm1, %v18507_v43 }
 0x177   : > { %17766 = vmatprep.subr.bf16.mxu1 %v18505_v39 }
 0x17d   : > { %16676 = vmatmul.mubr.f32.vlgmr.msra.gmra.mrb[4].mxu1 %v18770_v16 }
 0x17e   : > { %17768 = vmatpush3.bf16.msra.mxu1 %v18758_v63  ;;  %16682 = vmatprep.mubr.msk.f32.mxu1 %vm18506_vm1, %v18507_v43 }
 0x17f   : > { %17769 = vmatprep.subr.bf16.mxu1 %v18505_v39 }
 0x185   : > { %16683 = vmatmul.mubr.f32.vlgmr.msra.gmra.mrb[4].mxu1 %v18761_v8 }
 0x186   : > { %17771 = vmatpush3.bf16.msra.mxu1 %v18738_v40  ;;  %16689 = vmatprep.mubr.msk.f32.mxu1 %vm18506_vm1, %v18507_v43 }
 0x187   : > { %17772 = vmatprep.subr.bf16.mxu1 %v18505_v39 }
 0x18d   : > { %16690 = vmatmul.mubr.f32.vlgmr.msra.gmra.mrb[4].mxu1 %v18761_v8 }
 0x18e   : > { %17774 = vmatpush3.bf16.msra.mxu1 %v18734_v38  ;;  %16696 = vmatprep.mubr.msk.f32.mxu1 %vm18506_vm1, %v18507_v43 }
 0x18f   : > { %17775 = vmatprep.subr.bf16.mxu1 %v18505_v39 }
 0x195   : > { %16697 = vmatmul.mubr.f32.vlgmr.msra.gmra.mrb[4].mxu1 %v18778_v23  ;;  %v5568_v23 = vand.u32 4294901760, %v15970_v21 }
 0x196   : > { %17777 = vmatpush3.bf16.msra.mxu1 %v18748_v58  ;;  %16703 = vmatprep.mubr.msk.f32.mxu1 %vm18506_vm1, %v18507_v43 }
 0x197   : > { %17778 = vmatprep.subr.bf16.mxu1 %v18505_v39  ;;  %v5660_v25 = vsub.f32 %v15970_v21, %v5568_v23 }
 0x19d   : > { %16704 = vmatmul.mubr.f32.vlgmr.msra.gmra.mrb[4].mxu1 %v18764_v11 }
 0x19e   : > { %17780 = vmatpush3.bf16.msra.mxu1 %v18752_v60  ;;  %16710 = vmatprep.mubr.msk.f32.mxu1 %vm18506_vm1, %v18507_v43 }
 0x19f   : > { %17781 = vmatprep.subr.bf16.mxu1 %v18505_v39 }
 0x1a5   : > { %16711 = vmatmul.mubr.f32.vlgmr.msra.gmra.mrb[4].mxu1 %v18768_v15 }
 0x1a6   : > { %17783 = vmatpush3.bf16.msra.mxu1 %v18734_v38  ;;  %16717 = vmatprep.mubr.msk.f32.mxu1 %vm18506_vm1, %v18507_v43 }
 0x1a7   : > { %17784 = vmatprep.subr.bf16.mxu1 %v18505_v39 }
 0x1ad   : > { %16718 = vmatmul.mubr.f32.vlgmr.msra.gmra.mrb[4].mxu1 %v18773_v19 }
 0x1ae   : > { %17786 = vmatpush3.bf16.msra.mxu1 %v18756_v62  ;;  %16724 = vmatprep.mubr.msk.f32.mxu1 %vm18506_vm1, %v18507_v43 }
 0x1af   : > { %17787 = vmatprep.subr.bf16.mxu1 %v18505_v39 }
 0x1b5   : > { %16725 = vmatmul.mubr.f32.vlgmr.msra.gmra.mrb[4].mxu1 %v18764_v11 }
 0x1b6   : > { %17789 = vmatpush3.bf16.msra.mxu1 %v18734_v38  ;;  %16731 = vmatprep.mubr.msk.f32.mxu1 %vm18506_vm1, %v18507_v43 }
 0x1b7   : > { %16794 = vmatprep.subr.mxu1 %v18507_v43 }
 0x1bd   : > { %16732 = vmatmul.mubr.f32.vlgmr.msra.gmra.mrb[4].mxu1 %v18764_v11 }
 0x1be   : > { %16796 = vmatprep.mubr.msk.f32.mxu1 %vm18506_vm1, %v18507_v43  ;;  %16795 = vmatpush3.msra.mxu1 %v18898_v29 }
 0x1bf   : > { %16799 = vmatprep.subr.mxu1 %v18507_v43 }
 0x233   : > { %v1834_v30 = vpop.f32.mrb[2].mxu0 }
 0x234   : > { %v1372_v31 = vpop.f32.mrb[2].mxu1  ;;  %v16649_v33 = vpop.f32.mrb[3].mxu0 }
 0x235   : > { %v18911_v34 = vsub.f32 %v1372_v31, %v1834_v30  ;;  %v16607_v35 = vpop.f32.mrb[3].mxu1  ;;  %v5654_v30 = vand.u32 4294901760, %v5653_v24  ;;  %v5661_v31 = vand.u32 4294901760, %v5660_v25 }
 0x237   : > { %v2770_v41 = vmul.f32 %v18909_v32, %v18911_v34  ;;  %v2757_v56 = vmul.f32 %v18911_v34, %v18911_v34  ;;  %v5662_v33 = vsub.f32 %v5660_v25, %v5661_v31  ;;  %v17790_v34 = vpack.c.bf16 %v5568_v23, %v5565_v22 }
 0x239   : > { %v2774_v42 = vsel %vm2772_vm2, %v2770_v41, 0  ;;  %v5663_v41 = vand.u32 4294901760, %v5662_v33 }
 0x23a   : > { %v2842_v45 = vand.u32 4294901760, %v2774_v42 }
 0x23c   : > { %v2843_v47 = vsub.f32 %v2774_v42, %v2842_v45 }
 0x23e   : > { %v2844_v49 = vand.u32 4294901760, %v2843_v47 }
 0x240   : > { %v2845_v51 = vsub.f32 %v2843_v47, %v2844_v49 }
 0x242   : > { %v2846_v53 = vand.u32 4294901760, %v2845_v51 }
 0x244   : > { %16737 = vmatmul.mubr.f32.vlgmr.msra.gmra.mrb[4].mxu0 %v2846_v53  ;;  %16797 = vmatmul.mubr.f32.vlgmr.msra.gmra.mrb[6].mxu1 %v2846_v53 }
 0x245   : > { %16740 = vmatpush3.msra.mxu0 %v18932_v52  ;;  %16741 = vmatprep.mubr.msk.f32.mxu0 %vm18506_vm1, %v18507_v43 }
 0x246   : > { %16800 = vmatpush3.msra.mxu1 %v18934_v54  ;;  %16801 = vmatprep.mubr.msk.f32.mxu1 %vm18506_vm1, %v18507_v43 }
 0x247   : > { %16744 = vmatprep.subr.mxu0 %v18507_v43  ;;  %16804 = vmatprep.subr.mxu1 %v18507_v43 }
 0x24c   : > { %16742 = vmatmul.mubr.f32.vlgmr.msra.gmra.mrb[4].mxu0 %v2842_v45  ;;  %16802 = vmatmul.mubr.f32.vlgmr.msra.gmra.mrb[6].mxu1 %v2842_v45 }
 0x24d   : > { %16745 = vmatpush3.msra.mxu0 %v18914_v36  ;;  %16746 = vmatprep.mubr.msk.f32.mxu0 %vm18506_vm1, %v18507_v43 }
 0x24e   : > { %16805 = vmatpush3.msra.mxu1 %v18917_v37  ;;  %16806 = vmatprep.mubr.msk.f32.mxu1 %vm18506_vm1, %v18507_v43 }
 0x24f   : > { %16749 = vmatprep.subr.mxu0 %v18507_v43  ;;  %16809 = vmatprep.subr.mxu1 %v18507_v43 }
 0x254   : > { %16747 = vmatmul.mubr.f32.vlgmr.msra.gmra.mrb[4].mxu0 %v2843_v47  ;;  %16807 = vmatmul.mubr.f32.vlgmr.msra.gmra.mrb[6].mxu1 %v2843_v47  ;;  %v17806_v47 = vpack.c.bf16 %v5661_v31, %v5654_v30 }
 0x255   : > { %16750 = vmatpush3.msra.mxu0 %v18896_v28  ;;  %16751 = vmatprep.mubr.msk.f32.mxu0 %vm18506_vm1, %v18507_v43 }
 0x256   : > { %16810 = vmatpush3.msra.mxu1 %v18898_v29  ;;  %16811 = vmatprep.mubr.msk.f32.mxu1 %vm18506_vm1, %v18507_v43 }
 0x257   : > { %16754 = vmatprep.subr.mxu0 %v18507_v43  ;;  %16814 = vmatprep.subr.mxu1 %v18507_v43 }
 0x25c   : > { %16752 = vmatmul.mubr.f32.vlgmr.msra.gmra.mrb[4].mxu0 %v2844_v49  ;;  %16812 = vmatmul.mubr.f32.vlgmr.msra.gmra.mrb[6].mxu1 %v2844_v49  ;;  %v4566_v49 = vsel %vm2772_vm2, %v397_v48, 0 }
 0x25d   : > { %16755 = vmatpush3.msra.mxu0 %v18923_v44  ;;  %16756 = vmatprep.mubr.msk.f32.mxu0 %vm18506_vm1, %v18507_v43  ;;  %v19067_v50 = vand.u32 4294901760, %v4566_v49 }
 0x25e   : > { %16815 = vmatpush3.msra.mxu1 %v18926_v46  ;;  %16816 = vmatprep.mubr.msk.f32.mxu1 %vm18506_vm1, %v18507_v43 }
 0x25f   : > { %16759 = vmatprep.subr.mxu0 %v18507_v43  ;;  %16819 = vmatprep.subr.mxu1 %v18507_v43  ;;  %v19070_v51 = vsub.f32 %v4566_v49, %v19067_v50 }
 0x261   : > { %v19073_v53 = vand.u32 4294901760, %v19070_v51 }
 0x264   : > { %16757 = vmatmul.mubr.f32.vlgmr.msra.gmra.mrb[4].mxu0 %v2842_v45  ;;  %16817 = vmatmul.mubr.f32.vlgmr.msra.gmra.mrb[6].mxu1 %v2842_v45 }
 0x265   : > { %16760 = vmatpush3.msra.mxu0 %v18896_v28  ;;  %16761 = vmatprep.mubr.msk.f32.mxu0 %vm18506_vm1, %v18507_v43 }
 0x266   : > { %16820 = vmatpush3.msra.mxu1 %v18898_v29  ;;  %16821 = vmatprep.mubr.msk.f32.mxu1 %vm18506_vm1, %v18507_v43 }
 0x267   : > { %16764 = vmatprep.subr.mxu0 %v18507_v43  ;;  %16824 = vmatprep.subr.mxu1 %v18507_v43 }
 0x26c   : > { %16762 = vmatmul.mubr.f32.vlgmr.msra.gmra.mrb[4].mxu0 %v2842_v45  ;;  %16822 = vmatmul.mubr.f32.vlgmr.msra.gmra.mrb[6].mxu1 %v2842_v45  ;;  %v17798_v45 = vpack.c.bf16 %v5660_v25, %v5653_v24 }
 0x26d   : > { %16765 = vmatpush3.msra.mxu0 %v18898_v29  ;;  %16766 = vmatprep.mubr.msk.f32.mxu0 %vm18506_vm1, %v18507_v43 }
 0x26e   : > { %16825 = vmatpush3.msra.mxu1 %v18896_v28  ;;  %16826 = vmatprep.mubr.msk.f32.mxu1 %vm18506_vm1, %v18507_v43 }
 0x26f   : > { %16769 = vmatprep.subr.mxu0 %v18507_v43  ;;  %16829 = vmatprep.subr.mxu1 %v18507_v43 }
 0x290   : > { %v2753_v55 = vpop.f32.mrb[4].mxu1 }
 0x291   : > { %v2758_v57 = vmul.f32 %v2753_v55, %v2753_v55  ;;  %v2771_v0 = vmul.f32 %v18909_v32, %v2753_v55  ;;  %v16733_v1 = vpop.f32.mrb[5].mxu1  ;;  %v5655_v32 = vsub.f32 %v5653_v24, %v5654_v30  ;;  %v4640_v55 = vsub.f32 %v19070_v51, %v19073_v53  ;;  %v399_v24 = vld [vmem:[%s19802_s5] sm:$0xff] }
 0x292   : > { %v398_v1 = vld [vmem:[%s19801_s4 + $0x8] sm:$0xff]  ;;  %v5063_v25 = vsel %vm2772_vm2, %v399_v24, 0 }
 0x293   : > { %v2759_v2 = vadd.f32 %v2758_v57, %v2757_v56  ;;  %v3223_v3 = vsel %vm2772_vm2, %v2771_v0, 0  ;;  %v5656_v35 = vand.u32 4294901760, %v5655_v32  ;;  %v19077_v56 = vand.u32 4294901760, %v4640_v55  ;;  %v400_v32 = vld [vmem:[%s19802_s5 + $0x8] sm:$0xff] }
 0x294   : > { %v18988_v4 = vand.u32 4294901760, %v3223_v3  ;;  %v19106_v31 = vand.u32 4294901760, %v5063_v25 }
 0x295   : > { %18394 = vrsqrt.f32 %v2759_v2  ;;  %vm2762_vm3 = vcmp.eq.f32.partialorder %v2759_v2, inf  ;;  %v2765_v15 = vand.u32 2147483648, %v2759_v2  ;;  %vm2764_vm5 = vcmp.eq.f32.partialorder %v2759_v2, 0.0 }
 0x296   : > { %v3292_v5 = vsub.f32 %v3223_v3, %v18988_v4  ;;  %v17794_v42 = vpack.c.bf16 %v5663_v41, %v5656_v35  ;;  %v5066_v35 = vsel %vm2772_vm2, %v400_v32, 0 }
 0x298   : > { %v3293_v6 = vand.u32 4294901760, %v3292_v5 }
 0x29a   : > { %v3294_v8 = vsub.f32 %v3292_v5, %v3293_v6 }
 0x29c   : > { %v3295_v9 = vand.u32 4294901760, %v3294_v8 }
 0x29e   : > { %16767 = vmatmul.mubr.f32.vlgmr.msra.gmra.mrb[6].mxu0 %v3295_v9  ;;  %16827 = vmatmul.mubr.f32.vlgmr.msra.gmra.mrb[6].mxu1 %v3295_v9 }
 0x29f   : > { %v18395_v11 = vpop.eup %18394  ;;  %16770 = vmatpush3.msra.mxu0 %v18934_v54  ;;  %16771 = vmatprep.mubr.msk.f32.mxu0 %vm18506_vm1, %v18507_v43 }
 0x2a0   : > { %v2761_v12 = vmul.f32 %v18395_v11, %v2759_v2  ;;  %16830 = vmatpush3.msra.mxu1 %v18932_v52  ;;  %16831 = vmatprep.mubr.msk.f32.mxu1 %vm18506_vm1, %v18507_v43 }
 0x2a1   : > { %16774 = vmatprep.subr.mxu0 %v18507_v43  ;;  %16834 = vmatprep.subr.mxu1 %v18507_v43 }
 0x2a2   : > { %v2763_v16 = vsel %vm2762_vm3, %v2759_v2, %v2761_v12  ;;  %v4569_v2 = vsel %vm2772_vm2, %v398_v1, 0 }
 0x2a3   : > { %v2766_v19 = vsel %vm2764_vm5, %v2765_v15, %v2763_v16  ;;  %v19084_v3 = vand.u32 4294901760, %v4569_v2 }
 0x2a4   : > { %2768 = vst.msk [vmem:[%s19002_s11] sm:$0x3] %vm2767_vm4, %v2766_v19 }
 0x2a6   : > { %16772 = vmatmul.mubr.f32.vlgmr.msra.gmra.mrb[6].mxu0 %v18988_v4  ;;  %16832 = vmatmul.mubr.f32.vlgmr.msra.gmra.mrb[6].mxu1 %v18988_v4 }
 0x2a7   : > { %16775 = vmatpush3.msra.mxu0 %v18917_v37  ;;  %16776 = vmatprep.mubr.msk.f32.mxu0 %vm18506_vm1, %v18507_v43 }
 0x2a8   : > { %16835 = vmatpush3.msra.mxu1 %v18914_v36  ;;  %16836 = vmatprep.mubr.msk.f32.mxu1 %vm18506_vm1, %v18507_v43 }
 0x2a9   : > { %16779 = vmatprep.subr.mxu0 %v18507_v43  ;;  %16839 = vmatprep.subr.mxu1 %v18507_v43 }
 0x2ae   : > { %16777 = vmatmul.mubr.f32.vlgmr.msra.gmra.mrb[6].mxu0 %v3292_v5  ;;  %16837 = vmatmul.mubr.f32.vlgmr.msra.gmra.mrb[6].mxu1 %v3292_v5 }
 0x2af   : > { %16780 = vmatpush3.msra.mxu0 %v18898_v29  ;;  %16781 = vmatprep.mubr.msk.f32.mxu0 %vm18506_vm1, %v18507_v43 }
 0x2b0   : > { %16840 = vmatpush3.msra.mxu1 %v18896_v28  ;;  %16841 = vmatprep.mubr.msk.f32.mxu1 %vm18506_vm1, %v18507_v43 }
 0x2b1   : > { %16784 = vmatprep.subr.mxu0 %v18507_v43  ;;  %16844 = vmatprep.subr.mxu1 %v18507_v43 }
 0x2b6   : > { %16782 = vmatmul.mubr.f32.vlgmr.msra.gmra.mrb[6].mxu0 %v3293_v6  ;;  %16842 = vmatmul.mubr.f32.vlgmr.msra.gmra.mrb[6].mxu1 %v3293_v6 }
 0x2b7   : > { %16785 = vmatpush3.msra.mxu0 %v18926_v46  ;;  %16786 = vmatprep.mubr.msk.f32.mxu0 %vm18506_vm1, %v18507_v43 }
 0x2b8   : > { %16845 = vmatpush3.msra.mxu1 %v18923_v44  ;;  %16846 = vmatprep.mubr.msk.f32.mxu1 %vm18506_vm1, %v18507_v43 }
 0x2b9   : > { %16789 = vmatprep.subr.mxu0 %v18507_v43  ;;  %16849 = vmatprep.subr.mxu1 %v18507_v43 }
 0x2be   : > { %16787 = vmatmul.mubr.f32.vlgmr.msra.gmra.mrb[6].mxu0 %v18988_v4  ;;  %16847 = vmatmul.mubr.f32.vlgmr.msra.gmra.mrb[6].mxu1 %v18988_v4 }
 0x2bf   : > { %16790 = vmatpush3.msra.mxu0 %v18898_v29  ;;  %16791 = vmatprep.mubr.msk.f32.mxu0 %vm18506_vm1, %v18507_v43 }
 0x2c0   : > { %16850 = vmatpush3.msra.mxu1 %v18896_v28  ;;  %16851 = vmatprep.mubr.msk.f32.mxu1 %vm18506_vm1, %v18507_v43 }
 0x2c1   : > { %17791 = vmatprep.subr.bf16.mxu1 %v17790_v34 }
 0x2c6   : > { %16792 = vmatmul.mubr.f32.vlgmr.msra.gmra.mrb[6].mxu0 %v18988_v4  ;;  %16852 = vmatmul.mubr.f32.vlgmr.msra.gmra.mrb[6].mxu1 %v18988_v4  ;;  %v19087_v4 = vsub.f32 %v4569_v2, %v19084_v3 }
 0x2c7   : > { %17793 = vmatpush3.bf16.msra.mxu1 %v17790_v34  ;;  %16918 = vmatprep.mubr.f32.mxu1 %v18708_v26 }
 0x2c8   : > { %17795 = vmatprep.subr.bf16.mxu1 %v17794_v42  ;;  %16856 = vmatprep.mubr.f32.mxu0 %v19077_v56  ;;  %v19090_v5 = vand.u32 4294901760, %v19087_v4 }
 0x2ca   : > { %16919 = vmatmul.mubr.f32.vlgmr.msra.gmra.mrb[8].mxu1 %v18711_v27  ;;  %v4650_v6 = vsub.f32 %v19087_v4, %v19090_v5 }
 0x2cb   : > { %17797 = vmatpush3.bf16.msra.mxu1 %v17794_v42  ;;  %16925 = vmatprep.mubr.f32.mxu1 %v18685_v7  ;;  %v19120_v42 = vand.u32 4294901760, %v5066_v35 }
 0x2cc   : > { %17799 = vmatprep.subr.bf16.mxu1 %v17798_v45  ;;  %v19094_v19 = vand.u32 4294901760, %v4650_v6 }
 0x2cd   : > { %v19127_v48 = vsub.f32 %v5066_v35, %v19120_v42  ;;  %v18400_v35 = vld [vmem:[%s18670_s26 + $0x8] sm:$0xff] }
 0x2d2   : > { %16926 = vmatmul.mubr.f32.vlgmr.msra.gmra.mrb[8].mxu1 %v18688_v10 }
 0x2d3   : > { %17801 = vmatpush3.bf16.msra.mxu1 %v17798_v45  ;;  %16932 = vmatprep.mubr.f32.mxu1 %v18691_v13 }
 0x2d4   : > { %17803 = vmatprep.subr.bf16.mxu1 %v17790_v34 }
 0x2da   : > { %16933 = vmatmul.mubr.f32.vlgmr.msra.gmra.mrb[8].mxu1 %v18694_v14 }
 0x2db   : > { %17805 = vmatpush3.bf16.msra.mxu1 %v17790_v34  ;;  %16939 = vmatprep.mubr.f32.mxu1 %v18697_v17 }
 0x2dc   : > { %17807 = vmatprep.subr.bf16.mxu1 %v17806_v47 }
 0x2e2   : > { %16940 = vmatmul.mubr.f32.vlgmr.msra.gmra.mrb[8].mxu1 %v18700_v18 }
 0x2e3   : > { %17809 = vmatpush3.bf16.msra.mxu1 %v17806_v47  ;;  %16946 = vmatprep.mubr.f32.mxu1 %v18685_v7 }
 0x2e4   : > { %17811 = vmatprep.subr.bf16.mxu1 %v17790_v34 }
 0x2ea   : > { %16947 = vmatmul.mubr.f32.vlgmr.msra.gmra.mrb[8].mxu1 %v18688_v10 }
 0x2eb   : > { %17813 = vmatpush3.bf16.msra.mxu1 %v17790_v34  ;;  %16953 = vmatprep.mubr.f32.mxu1 %v18685_v7  ;;  %v19116_v34 = vsub.f32 %v5063_v25, %v19106_v31 }
 0x2ec   : > { %17832 = vmatprep.subr.bf16.mxu1 %v18505_v39 }
 0x2ed   : > { %v19123_v45 = vand.u32 4294901760, %v19116_v34 }
 0x2ef   : > { %v5137_v49 = vsub.f32 %v19116_v34, %v19123_v45 }
 0x2f1   : > { %v19136_v1 = vand.u32 4294901760, %v5137_v49 }
 0x2f2   : > { %16954 = vmatmul.mubr.f32.vlgmr.msra.gmra.mrb[8].mxu1 %v18688_v10 }
 0x2f3   : > { %17834 = vmatpush3.bf16.msra.mxu1 %v18734_v38  ;;  %17002 = vmatprep.mubr.msk.f32.mxu1 %vm18506_vm1, %v18507_v43 }
 0x2f4   : > { %17835 = vmatprep.subr.bf16.mxu1 %v18505_v39 }
 0x33f   : > { %v3218_v57 = vpop.f32.mrb[4].mxu0 }
 0x340   : > { %v16763_v0 = vpop.f32.mrb[5].mxu0 }
 0x399   : > { %v3667_v8 = vpop.f32.mrb[6].mxu0  ;;  %v4560_v9 = vpop.f32.mrb[6].mxu1 }
 0x39a   : > { %v3671_v11 = vsub.f32 %v3218_v57, %v3667_v8  ;;  %v16793_v12 = vpop.f32.mrb[7].mxu0  ;;  %v16853_v15 = vpop.f32.mrb[7].mxu1  ;;  %v4564_v30 = vsub.f32 0.0, %v4560_v9  ;;  %v19134_v57 = vand.u32 4294901760, %v19127_v48 }
 0x39c   : > { %v4572_v16 = vand.u32 4294901760, %v3671_v11  ;;  %v19111_v33 = vand.u32 4294901760, %v4564_v30 }
 0x39e   : > { %v4659_v20 = vsub.f32 %v3671_v11, %v4572_v16  ;;  %16854 = vmatprep.subr.mxu0 %v4572_v16  ;;  %v5156_v41 = vsub.f32 %v4564_v30, %v19111_v33  ;;  %v5147_v11 = vsub.f32 %v19127_v48, %v19134_v57 }
 0x39f   : > { %16855 = vmatpush3.msra.mxu0 %v4572_v16 }
 0x3a0   : > { %16857 = vmatmul.mubr.f32.vlgmr.msra.gmra.mrb[8].mxu0 %v19094_v19  ;;  %v4660_v21 = vand.u32 4294901760, %v4659_v20  ;;  %v5157_v47 = vand.u32 4294901760, %v5156_v41 }
 0x3a1   : > { %16861 = vmatprep.mubr.f32.mxu0 %v19067_v50 }
 0x3a2   : > { %v4661_v22 = vsub.f32 %v4659_v20, %v4660_v21  ;;  %v5158_v55 = vsub.f32 %v5156_v41, %v5157_v47 }
 0x3a4   : > { %v4662_v23 = vand.u32 4294901760, %v4661_v22  ;;  %v5159_v9 = vand.u32 4294901760, %v5158_v55  ;;  %v18401_v55 = vld [vmem:[%s18670_s26] sm:$0xff] }
 0x3a6   : > { %16859 = vmatprep.subr.mxu0 %v4662_v23 }
 0x3a7   : > { %16860 = vmatpush3.msra.mxu0 %v4662_v23 }
 0x3a8   : > { %16862 = vmatmul.mubr.f32.vlgmr.msra.gmra.mrb[8].mxu0 %v19084_v3  ;;  %16864 = vmatprep.subr.mxu0 %v4659_v20 }
 0x3a9   : > { %16865 = vmatpush3.msra.mxu0 %v4659_v20  ;;  %16866 = vmatprep.mubr.f32.mxu0 %v19070_v51 }
 0x3aa   : > { %16869 = vmatprep.subr.mxu0 %v4572_v16 }
 0x3b0   : > { %16867 = vmatmul.mubr.f32.vlgmr.msra.gmra.mrb[8].mxu0 %v19087_v4 }
 0x3b1   : > { %16870 = vmatpush3.msra.mxu0 %v4572_v16  ;;  %16871 = vmatprep.mubr.f32.mxu0 %v19073_v53 }
 0x3b2   : > { %16874 = vmatprep.subr.mxu0 %v4660_v21 }
 0x3b8   : > { %16872 = vmatmul.mubr.f32.vlgmr.msra.gmra.mrb[8].mxu0 %v19090_v5 }
 0x3b9   : > { %16875 = vmatpush3.msra.mxu0 %v4660_v21  ;;  %16876 = vmatprep.mubr.f32.mxu0 %v19067_v50 }
 0x3ba   : > { %16879 = vmatprep.subr.mxu0 %v4572_v16 }
 0x3c0   : > { %16877 = vmatmul.mubr.f32.vlgmr.msra.gmra.mrb[8].mxu0 %v19084_v3 }
 0x3c1   : > { %16880 = vmatpush3.msra.mxu0 %v4572_v16  ;;  %16881 = vmatprep.mubr.f32.mxu0 %v19067_v50  ;;  %v19152_v16 = vand.u32 4294901760, %v5147_v11 }
 0x3c2   : > { %16884 = vmatprep.subr.mxu0 %v19111_v33 }
 0x3c5   : > { %v16955_v0 = vpop.f32.mrb[8].mxu1 }
 0x3c6   : > { %v6529_v2 = vsel %vm405_vm0, %v16955_v0, 0  ;;  %v6056_v6 = vpop.f32.mrb[9].mxu1 }
 0x3c7   : > { %v19139_v8 = vand.u32 4294901760, %v6529_v2  ;;  %v6067_v22 = vsel %vm405_vm0, %v6056_v6, 0 }
 0x3c8   : > { %16882 = vmatmul.mubr.f32.vlgmr.msra.gmra.mrb[8].mxu0 %v19084_v3  ;;  %v19184_v23 = vand.u32 4294901760, %v6067_v22 }
 0x3c9   : > { %v19145_v12 = vsub.f32 %v6529_v2, %v19139_v8  ;;  %16885 = vmatpush3.msra.mxu0 %v19111_v33  ;;  %16886 = vmatprep.mubr.f32.mxu0 %v19136_v1 }
 0x3ca   : > { %16889 = vmatprep.subr.mxu0 %v5159_v9  ;;  %v19193_v24 = vsub.f32 %v6067_v22, %v19184_v23 }
 0x3cb   : > { %v19150_v15 = vand.u32 4294901760, %v19145_v12 }
 0x3cc   : > { %v19199_v25 = vand.u32 4294901760, %v19193_v24 }
 0x3cd   : > { %v6601_v20 = vsub.f32 %v19145_v12, %v19150_v15 }
 0x3ce   : > { %v6139_v30 = vsub.f32 %v19193_v24, %v19199_v25 }
 0x3cf   : > { %v19156_v21 = vand.u32 4294901760, %v6601_v20 }
 0x3d0   : > { %16887 = vmatmul.mubr.f32.vlgmr.msra.gmra.mrb[8].mxu0 %v19152_v16  ;;  %v6140_v32 = vand.u32 4294901760, %v6139_v30 }
 0x3d1   : > { %16890 = vmatpush3.msra.mxu0 %v5159_v9  ;;  %17003 = vmatmul.mubr.f32.vlgmr.msra.gmra.mrb[10].mxu1 %v19156_v21 }
 0x3d2   : > { %16894 = vmatprep.subr.mxu0 %v5156_v41  ;;  %17837 = vmatpush3.bf16.msra.mxu1 %v18748_v58 }
 0x3d3   : > { %16891 = vmatprep.mubr.f32.mxu0 %v19106_v31  ;;  %17009 = vmatprep.mubr.msk.f32.mxu1 %vm18506_vm1, %v18507_v43 }
 0x3d4   : > { %17838 = vmatprep.subr.bf16.mxu1 %v18505_v39 }
 0x3d8   : > { %16892 = vmatmul.mubr.f32.vlgmr.msra.gmra.mrb[8].mxu0 %v19120_v42 }
 0x3d9   : > { %16895 = vmatpush3.msra.mxu0 %v5156_v41  ;;  %17010 = vmatmul.mubr.f32.vlgmr.msra.gmra.mrb[10].mxu1 %v19139_v8 }
 0x3da   : > { %16899 = vmatprep.subr.mxu0 %v19111_v33  ;;  %17840 = vmatpush3.bf16.msra.mxu1 %v18752_v60 }
 0x3db   : > { %16896 = vmatprep.mubr.f32.mxu0 %v19116_v34  ;;  %17016 = vmatprep.mubr.msk.f32.mxu1 %vm18506_vm1, %v18507_v43 }
 0x3dc   : > { %17841 = vmatprep.subr.bf16.mxu1 %v18505_v39 }
 0x3e0   : > { %16897 = vmatmul.mubr.f32.vlgmr.msra.gmra.mrb[8].mxu0 %v19127_v48 }
 0x3e1   : > { %16900 = vmatpush3.msra.mxu0 %v19111_v33  ;;  %17017 = vmatmul.mubr.f32.vlgmr.msra.gmra.mrb[10].mxu1 %v19145_v12 }
 0x3e2   : > { %16904 = vmatprep.subr.mxu0 %v5157_v47  ;;  %17843 = vmatpush3.bf16.msra.mxu1 %v18734_v38 }
 0x3e3   : > { %16901 = vmatprep.mubr.f32.mxu0 %v19123_v45  ;;  %17023 = vmatprep.mubr.msk.f32.mxu1 %vm18506_vm1, %v18507_v43 }
 0x3e4   : > { %17844 = vmatprep.subr.bf16.mxu1 %v18505_v39 }
 0x3e8   : > { %16902 = vmatmul.mubr.f32.vlgmr.msra.gmra.mrb[8].mxu0 %v19134_v57 }
 0x3e9   : > { %16905 = vmatpush3.msra.mxu0 %v5157_v47  ;;  %17024 = vmatmul.mubr.f32.vlgmr.msra.gmra.mrb[10].mxu1 %v19150_v15 }
 0x3ea   : > { %16909 = vmatprep.subr.mxu0 %v19111_v33  ;;  %17846 = vmatpush3.bf16.msra.mxu1 %v18756_v62 }
 0x3eb   : > { %16906 = vmatprep.mubr.f32.mxu0 %v19106_v31  ;;  %17030 = vmatprep.mubr.msk.f32.mxu1 %vm18506_vm1, %v18507_v43 }
 0x3ec   : > { %17847 = vmatprep.subr.bf16.mxu1 %v18505_v39 }
 0x3f0   : > { %16907 = vmatmul.mubr.f32.vlgmr.msra.gmra.mrb[8].mxu0 %v19120_v42 }
 0x3f1   : > { %16910 = vmatpush3.msra.mxu0 %v19111_v33  ;;  %17031 = vmatmul.mubr.f32.vlgmr.msra.gmra.mrb[10].mxu1 %v19139_v8 }
 0x3f2   : > { %17849 = vmatpush3.bf16.msra.mxu1 %v18734_v38  ;;  %16911 = vmatprep.mubr.f32.mxu0 %v19106_v31 }
 0x3f3   : > { %17814 = vmatprep.subr.bf16.mxu0 %v18505_v39  ;;  %17037 = vmatprep.mubr.msk.f32.mxu1 %vm18506_vm1, %v18507_v43 }
 0x3f4   : > { %17124 = vmatprep.subr.mxu1 %v18507_v43 }
 0x3f8   : > { %16912 = vmatmul.mubr.f32.vlgmr.msra.gmra.mrb[8].mxu0 %v19120_v42 }
 0x3f9   : > { %17816 = vmatpush3.bf16.msra.mxu0 %v18738_v40  ;;  %17038 = vmatmul.mubr.f32.vlgmr.msra.gmra.mrb[10].mxu1 %v19139_v8 }
 0x3fa   : > { %16960 = vmatprep.mubr.msk.f32.mxu0 %vm18506_vm1, %v18507_v43  ;;  %17817 = vmatprep.subr.bf16.mxu0 %v18505_v39 }
 0x3fb   : > { %17125 = vmatpush3.msra.mxu1 %v18896_v28  ;;  %17126 = vmatprep.mubr.msk.f32.mxu1 %vm18506_vm1, %v18507_v43 }
 0x3fc   : > { %16961 = vmatmul.mubr.f32.vlgmr.msra.gmra.mrb[10].mxu0 %v6140_v32  ;;  %17129 = vmatprep.subr.mxu1 %v18507_v43 }
 0x3fd   : > { %17819 = vmatpush3.bf16.msra.mxu0 %v18750_v59  ;;  %16967 = vmatprep.mubr.msk.f32.mxu0 %vm18506_vm1, %v18507_v43 }
 0x3fe   : > { %17820 = vmatprep.subr.bf16.mxu0 %v18505_v39 }
 0x404   : > { %16968 = vmatmul.mubr.f32.vlgmr.msra.gmra.mrb[10].mxu0 %v19184_v23 }
 0x405   : > { %17822 = vmatpush3.bf16.msra.mxu0 %v18754_v61  ;;  %16974 = vmatprep.mubr.msk.f32.mxu0 %vm18506_vm1, %v18507_v43 }
 0x406   : > { %17823 = vmatprep.subr.bf16.mxu0 %v18505_v39 }
 0x40c   : > { %16975 = vmatmul.mubr.f32.vlgmr.msra.gmra.mrb[10].mxu0 %v19193_v24 }
 0x40d   : > { %17825 = vmatpush3.bf16.msra.mxu0 %v18738_v40  ;;  %16981 = vmatprep.mubr.msk.f32.mxu0 %vm18506_vm1, %v18507_v43 }
 0x40e   : > { %17826 = vmatprep.subr.bf16.mxu0 %v18505_v39 }
 0x414   : > { %16982 = vmatmul.mubr.f32.vlgmr.msra.gmra.mrb[10].mxu0 %v19199_v25 }
 0x415   : > { %17828 = vmatpush3.bf16.msra.mxu0 %v18758_v63  ;;  %16988 = vmatprep.mubr.msk.f32.mxu0 %vm18506_vm1, %v18507_v43 }
 0x416   : > { %17829 = vmatprep.subr.bf16.mxu0 %v18505_v39 }
 0x41c   : > { %16989 = vmatmul.mubr.f32.vlgmr.msra.gmra.mrb[10].mxu0 %v19184_v23 }
 0x41d   : > { %17831 = vmatpush3.bf16.msra.mxu0 %v18738_v40  ;;  %16995 = vmatprep.mubr.msk.f32.mxu0 %vm18506_vm1, %v18507_v43 }
 0x41e   : > { %17850 = vmatprep.subr.bf16.mxu0 %v18505_v39 }
 0x424   : > { %16996 = vmatmul.mubr.f32.vlgmr.msra.gmra.mrb[10].mxu0 %v19184_v23 }
 0x425   : > { %17852 = vmatpush3.bf16.msra.mxu0 %v18738_v40  ;;  %17044 = vmatprep.mubr.msk.f32.mxu0 %vm18506_vm1, %v18507_v43 }
 0x426   : > { %17853 = vmatprep.subr.bf16.mxu0 %v18505_v39 }
 0x428   : > { %17045 = vmatmul.mubr.f32.vlgmr.msra.gmra.mrb[12].mxu0 %v19156_v21 }
 0x429   : > { %17855 = vmatpush3.bf16.msra.mxu0 %v18750_v59  ;;  %17051 = vmatprep.mubr.msk.f32.mxu0 %vm18506_vm1, %v18507_v43 }
 0x42a   : > { %17856 = vmatprep.subr.bf16.mxu0 %v18505_v39 }
 0x430   : > { %17052 = vmatmul.mubr.f32.vlgmr.msra.gmra.mrb[12].mxu0 %v19139_v8 }
 0x431   : > { %17858 = vmatpush3.bf16.msra.mxu0 %v18754_v61  ;;  %17058 = vmatprep.mubr.msk.f32.mxu0 %vm18506_vm1, %v18507_v43 }
 0x432   : > { %17859 = vmatprep.subr.bf16.mxu0 %v18505_v39 }
 0x438   : > { %17059 = vmatmul.mubr.f32.vlgmr.msra.gmra.mrb[12].mxu0 %v19145_v12 }
 0x439   : > { %17861 = vmatpush3.bf16.msra.mxu0 %v18738_v40  ;;  %17065 = vmatprep.mubr.msk.f32.mxu0 %vm18506_vm1, %v18507_v43 }
 0x43a   : > { %17862 = vmatprep.subr.bf16.mxu0 %v18505_v39 }
 0x440   : > { %17066 = vmatmul.mubr.f32.vlgmr.msra.gmra.mrb[12].mxu0 %v19150_v15 }
 0x441   : > { %17864 = vmatpush3.bf16.msra.mxu0 %v18758_v63  ;;  %17072 = vmatprep.mubr.msk.f32.mxu0 %vm18506_vm1, %v18507_v43 }
 0x442   : > { %17865 = vmatprep.subr.bf16.mxu0 %v18505_v39 }
 0x448   : > { %17073 = vmatmul.mubr.f32.vlgmr.msra.gmra.mrb[12].mxu0 %v19139_v8 }
 0x449   : > { %17867 = vmatpush3.bf16.msra.mxu0 %v18738_v40  ;;  %17079 = vmatprep.mubr.msk.f32.mxu0 %vm18506_vm1, %v18507_v43 }
 0x44a   : > { %17868 = vmatprep.subr.bf16.mxu0 %v18505_v39 }
 0x450   : > { %17080 = vmatmul.mubr.f32.vlgmr.msra.gmra.mrb[12].mxu0 %v19139_v8  ;;  %v15972_v8 = vld [vmem:[%s19805_s8 + $0x8] sm:$0xff] }
 0x451   : > { %17870 = vmatpush3.bf16.msra.mxu0 %v18734_v38  ;;  %17086 = vmatprep.mubr.msk.f32.mxu0 %vm18506_vm1, %v18507_v43 }
 0x452   : > { %17871 = vmatprep.subr.bf16.mxu0 %v18505_v39 }
 0x458   : > { %17087 = vmatmul.mubr.f32.vlgmr.msra.gmra.mrb[12].mxu0 %v6140_v32 }
 0x459   : > { %17873 = vmatpush3.bf16.msra.mxu0 %v18748_v58  ;;  %17093 = vmatprep.mubr.msk.f32.mxu0 %vm18506_vm1, %v18507_v43 }
 0x45a   : > { %17874 = vmatprep.subr.bf16.mxu0 %v18505_v39 }
 0x460   : > { %17094 = vmatmul.mubr.f32.vlgmr.msra.gmra.mrb[12].mxu0 %v19184_v23 }
 0x461   : > { %17876 = vmatpush3.bf16.msra.mxu0 %v18752_v60  ;;  %17100 = vmatprep.mubr.msk.f32.mxu0 %vm18506_vm1, %v18507_v43 }
 0x462   : > { %17877 = vmatprep.subr.bf16.mxu0 %v18505_v39 }
 0x468   : > { %17101 = vmatmul.mubr.f32.vlgmr.msra.gmra.mrb[12].mxu0 %v19193_v24 }
 0x469   : > { %17879 = vmatpush3.bf16.msra.mxu0 %v18734_v38  ;;  %17107 = vmatprep.mubr.msk.f32.mxu0 %vm18506_vm1, %v18507_v43 }
 0x46a   : > { %17880 = vmatprep.subr.bf16.mxu0 %v18505_v39 }
 0x470   : > { %17108 = vmatmul.mubr.f32.vlgmr.msra.gmra.mrb[12].mxu0 %v19199_v25 }
 0x471   : > { %17882 = vmatpush3.bf16.msra.mxu0 %v18756_v62  ;;  %17114 = vmatprep.mubr.msk.f32.mxu0 %vm18506_vm1, %v18507_v43 }
 0x472   : > { %17883 = vmatprep.subr.bf16.mxu0 %v18505_v39 }
 0x478   : > { %17115 = vmatmul.mubr.f32.vlgmr.msra.gmra.mrb[12].mxu0 %v19184_v23 }
 0x479   : > { %17885 = vmatpush3.bf16.msra.mxu0 %v18734_v38  ;;  %17121 = vmatprep.mubr.msk.f32.mxu0 %vm18506_vm1, %v18507_v43 }
 0x47a   : > { %17184 = vmatprep.subr.mxu0 %v18507_v43 }
 0x480   : > { %17122 = vmatmul.mubr.f32.vlgmr.msra.gmra.mrb[12].mxu0 %v19184_v23 }
 0x481   : > { %17185 = vmatpush3.msra.mxu0 %v18898_v29  ;;  %17186 = vmatprep.mubr.msk.f32.mxu0 %vm18506_vm1, %v18507_v43 }
 0x482   : > { %17189 = vmatprep.subr.mxu0 %v18507_v43 }
 0x4cb   : > { %v16913_v33 = vpop.f32.mrb[8].mxu0 }
 0x4cc   : > { %v17984_v41 = vadd.f32 %v18400_v35, %v16913_v33  ;;  %v5547_v47 = vpop.f32.mrb[9].mxu0  ;;  %v6986_v49 = vpop.f32.mrb[10].mxu1 }
 0x4cd   : > { %v17985_v0 = vadd.f32 %v18401_v55, %v5547_v47  ;;  %v17039_v2 = vpop.f32.mrb[11].mxu1 }
 0x4ce   : > { %5560 = vst.msk [vmem:[%s19311_s22 + $0x8] sm:$0xff] %vm405_vm0, %v17984_v41 }
 0x4cf   : > { %5559 = vst.msk [vmem:[%s19311_s22] sm:$0xff] %vm405_vm0, %v17985_v0 }
 0x4f7   : > { %v6524_v6 = vpop.f32.mrb[10].mxu0 }
 0x4f8   : > { %v6990_v9 = vsub.f32 %v6524_v6, %v6986_v49  ;;  %v16997_v11 = vpop.f32.mrb[11].mxu0 }
 0x4fa   : > { %v7923_v12 = vmul.f32 %v15972_v8, %v6990_v9  ;;  %v7909_v30 = vmul.f32 %v6990_v9, %v6990_v9 }
 0x4fc   : > { %v7926_v15 = vsel %vm2772_vm2, %v7923_v12, 0 }
 0x4fd   : > { %v7994_v20 = vand.u32 4294901760, %v7926_v15 }
 0x4ff   : > { %v7995_v21 = vsub.f32 %v7926_v15, %v7994_v20 }
 0x501   : > { %v7996_v22 = vand.u32 4294901760, %v7995_v21 }
 0x503   : > { %v7997_v23 = vsub.f32 %v7995_v21, %v7996_v22 }
 0x505   : > { %v7998_v24 = vand.u32 4294901760, %v7997_v23 }
 0x507   : > { %17127 = vmatmul.mubr.f32.vlgmr.msra.gmra.mrb[12].mxu1 %v7998_v24  ;;  %17187 = vmatmul.mubr.f32.vlgmr.msra.gmra.mrb[14].mxu0 %v7998_v24 }
 0x508   : > { %17130 = vmatpush3.msra.mxu1 %v18932_v52  ;;  %17131 = vmatprep.mubr.msk.f32.mxu1 %vm18506_vm1, %v18507_v43 }
 0x509   : > { %17190 = vmatpush3.msra.mxu0 %v18934_v54  ;;  %17191 = vmatprep.mubr.msk.f32.mxu0 %vm18506_vm1, %v18507_v43 }
 0x50a   : > { %17134 = vmatprep.subr.mxu1 %v18507_v43  ;;  %17194 = vmatprep.subr.mxu0 %v18507_v43 }
 0x50f   : > { %17132 = vmatmul.mubr.f32.vlgmr.msra.gmra.mrb[12].mxu1 %v7994_v20  ;;  %17192 = vmatmul.mubr.f32.vlgmr.msra.gmra.mrb[14].mxu0 %v7994_v20 }
 0x510   : > { %17135 = vmatpush3.msra.mxu1 %v18914_v36  ;;  %17136 = vmatprep.mubr.msk.f32.mxu1 %vm18506_vm1, %v18507_v43 }
 0x511   : > { %17195 = vmatpush3.msra.mxu0 %v18917_v37  ;;  %17196 = vmatprep.mubr.msk.f32.mxu0 %vm18506_vm1, %v18507_v43 }
 0x512   : > { %17139 = vmatprep.subr.mxu1 %v18507_v43  ;;  %17199 = vmatprep.subr.mxu0 %v18507_v43 }
 0x517   : > { %17137 = vmatmul.mubr.f32.vlgmr.msra.gmra.mrb[12].mxu1 %v7995_v21  ;;  %17197 = vmatmul.mubr.f32.vlgmr.msra.gmra.mrb[14].mxu0 %v7995_v21  ;;  %v19397_v21 = vld [vmem:[%s18670_s26 + $0x28] sm:$0xff] }
 0x518   : > { %17140 = vmatpush3.msra.mxu1 %v18896_v28  ;;  %17141 = vmatprep.mubr.msk.f32.mxu1 %vm18506_vm1, %v18507_v43  ;;  %v10709_v23 = vand.u32 4294901760, %v19397_v21 }
 0x519   : > { %17200 = vmatpush3.msra.mxu0 %v18898_v29  ;;  %17201 = vmatprep.mubr.msk.f32.mxu0 %vm18506_vm1, %v18507_v43 }
 0x51a   : > { %17144 = vmatprep.subr.mxu1 %v18507_v43  ;;  %17204 = vmatprep.subr.mxu0 %v18507_v43 }
 0x51f   : > { %17142 = vmatmul.mubr.f32.vlgmr.msra.gmra.mrb[12].mxu1 %v7996_v22  ;;  %17202 = vmatmul.mubr.f32.vlgmr.msra.gmra.mrb[14].mxu0 %v7996_v22 }
 0x520   : > { %17145 = vmatpush3.msra.mxu1 %v18923_v44  ;;  %17146 = vmatprep.mubr.msk.f32.mxu1 %vm18506_vm1, %v18507_v43 }
 0x521   : > { %17205 = vmatpush3.msra.mxu0 %v18926_v46  ;;  %17206 = vmatprep.mubr.msk.f32.mxu0 %vm18506_vm1, %v18507_v43 }
 0x522   : > { %17149 = vmatprep.subr.mxu1 %v18507_v43  ;;  %17209 = vmatprep.subr.mxu0 %v18507_v43 }
 0x527   : > { %17147 = vmatmul.mubr.f32.vlgmr.msra.gmra.mrb[12].mxu1 %v7994_v20  ;;  %17207 = vmatmul.mubr.f32.vlgmr.msra.gmra.mrb[14].mxu0 %v7994_v20 }
 0x528   : > { %17150 = vmatpush3.msra.mxu1 %v18896_v28  ;;  %17151 = vmatprep.mubr.msk.f32.mxu1 %vm18506_vm1, %v18507_v43 }
 0x529   : > { %17210 = vmatpush3.msra.mxu0 %v18898_v29  ;;  %17211 = vmatprep.mubr.msk.f32.mxu0 %vm18506_vm1, %v18507_v43 }
 0x52a   : > { %17154 = vmatprep.subr.mxu1 %v18507_v43  ;;  %17214 = vmatprep.subr.mxu0 %v18507_v43 }
 0x52f   : > { %17152 = vmatmul.mubr.f32.vlgmr.msra.gmra.mrb[12].mxu1 %v7994_v20  ;;  %17212 = vmatmul.mubr.f32.vlgmr.msra.gmra.mrb[14].mxu0 %v7994_v20  ;;  %v19394_v20 = vld [vmem:[%s18670_s26 + $0x20] sm:$0xff] }
 0x530   : > { %17155 = vmatpush3.msra.mxu1 %v18898_v29  ;;  %17156 = vmatprep.mubr.msk.f32.mxu1 %vm18506_vm1, %v18507_v43  ;;  %v10706_v22 = vand.u32 4294901760, %v19394_v20 }
 0x531   : > { %17215 = vmatpush3.msra.mxu0 %v18896_v28  ;;  %17216 = vmatprep.mubr.msk.f32.mxu0 %vm18506_vm1, %v18507_v43 }
 0x532   : > { %17159 = vmatprep.subr.mxu1 %v18507_v43  ;;  %17219 = vmatprep.subr.mxu0 %v18507_v43  ;;  %v10794_v24 = vsub.f32 %v19394_v20, %v10706_v22 }
 0x553   : > { %v7905_v25 = vpop.f32.mrb[12].mxu0 }
 0x554   : > { %v7910_v32 = vmul.f32 %v7905_v25, %v7905_v25  ;;  %v7924_v33 = vmul.f32 %v15972_v8, %v7905_v25  ;;  %v17123_v35 = vpop.f32.mrb[13].mxu0  ;;  %v10801_v25 = vsub.f32 %v19397_v21, %v10709_v23 }
 0x556   : > { %v7911_v41 = vadd.f32 %v7910_v32, %v7909_v30  ;;  %v8375_v47 = vsel %vm2772_vm2, %v7924_v33, 0  ;;  %v10795_v30 = vand.u32 4294901760, %v10794_v24  ;;  %v10802_v32 = vand.u32 4294901760, %v10801_v25 }
 0x557   : > { %v19370_v49 = vand.u32 4294901760, %v8375_v47 }
 0x558   : > { %18396 = vrsqrt.f32 %v7911_v41  ;;  %vm7914_vm6 = vcmp.eq.f32.partialorder %v7911_v41, inf  ;;  %v7917_v9 = vand.u32 2147483648, %v7911_v41  ;;  %vm7916_vm7 = vcmp.eq.f32.partialorder %v7911_v41, 0.0 }
 0x559   : > { %v8444_v55 = vsub.f32 %v8375_v47, %v19370_v49  ;;  %v10796_v33 = vsub.f32 %v10794_v24, %v10795_v30  ;;  %v10803_v35 = vsub.f32 %v10801_v25, %v10802_v32 }
 0x55b   : > { %v8445_v0 = vand.u32 4294901760, %v8444_v55  ;;  %v10797_v47 = vand.u32 4294901760, %v10796_v33 }
 0x55d   : > { %v8446_v2 = vsub.f32 %v8444_v55, %v8445_v0 }
 0x55f   : > { %v8447_v6 = vand.u32 4294901760, %v8446_v2  ;;  %v17894_v2 = vpack.c.bf16 %v10801_v25, %v10794_v24 }
 0x561   : > { %17157 = vmatmul.mubr.f32.vlgmr.msra.gmra.mrb[14].mxu1 %v8447_v6  ;;  %17217 = vmatmul.mubr.f32.vlgmr.msra.gmra.mrb[14].mxu0 %v8447_v6 }
 0x562   : > { %v18397_v11 = vpop.eup %18396  ;;  %17160 = vmatpush3.msra.mxu1 %v18934_v54  ;;  %17161 = vmatprep.mubr.msk.f32.mxu1 %vm18506_vm1, %v18507_v43 }
 0x563   : > { %v7913_v8 = vmul.f32 %v18397_v11, %v7911_v41  ;;  %17220 = vmatpush3.msra.mxu0 %v18932_v52  ;;  %17221 = vmatprep.mubr.msk.f32.mxu0 %vm18506_vm1, %v18507_v43 }
 0x564   : > { %17164 = vmatprep.subr.mxu1 %v18507_v43  ;;  %17224 = vmatprep.subr.mxu0 %v18507_v43 }
 0x565   : > { %v7915_v12 = vsel %vm7914_vm6, %v7911_v41, %v7913_v8  ;;  %v17886_v41 = vpack.c.bf16 %v10709_v23, %v10706_v22 }
 0x566   : > { %v7918_v15 = vsel %vm7916_vm7, %v7917_v9, %v7915_v12 }
 0x567   : > { %15971 = vst.msk [vmem:[%s19002_s11 + $0x2] sm:$0x3] %vm2767_vm4, %v7918_v15 }
 0x569   : > { %17162 = vmatmul.mubr.f32.vlgmr.msra.gmra.mrb[14].mxu1 %v19370_v49  ;;  %17222 = vmatmul.mubr.f32.vlgmr.msra.gmra.mrb[14].mxu0 %v19370_v49 }
 0x56a   : > { %17165 = vmatpush3.msra.mxu1 %v18917_v37  ;;  %17166 = vmatprep.mubr.msk.f32.mxu1 %vm18506_vm1, %v18507_v43 }
 0x56b   : > { %17225 = vmatpush3.msra.mxu0 %v18914_v36  ;;  %17226 = vmatprep.mubr.msk.f32.mxu0 %vm18506_vm1, %v18507_v43 }
 0x56c   : > { %17169 = vmatprep.subr.mxu1 %v18507_v43  ;;  %17229 = vmatprep.subr.mxu0 %v18507_v43 }
 0x571   : > { %17167 = vmatmul.mubr.f32.vlgmr.msra.gmra.mrb[14].mxu1 %v8444_v55  ;;  %17227 = vmatmul.mubr.f32.vlgmr.msra.gmra.mrb[14].mxu0 %v8444_v55  ;;  %v10804_v55 = vand.u32 4294901760, %v10803_v35 }
 0x572   : > { %17170 = vmatpush3.msra.mxu1 %v18898_v29  ;;  %17171 = vmatprep.mubr.msk.f32.mxu1 %vm18506_vm1, %v18507_v43 }
 0x573   : > { %17230 = vmatpush3.msra.mxu0 %v18896_v28  ;;  %17231 = vmatprep.mubr.msk.f32.mxu0 %vm18506_vm1, %v18507_v43 }
 0x574   : > { %17174 = vmatprep.subr.mxu1 %v18507_v43  ;;  %17234 = vmatprep.subr.mxu0 %v18507_v43 }
 0x579   : > { %17172 = vmatmul.mubr.f32.vlgmr.msra.gmra.mrb[14].mxu1 %v8445_v0  ;;  %17232 = vmatmul.mubr.f32.vlgmr.msra.gmra.mrb[14].mxu0 %v8445_v0  ;;  %v17890_v0 = vpack.c.bf16 %v10804_v55, %v10797_v47 }
 0x57a   : > { %17175 = vmatpush3.msra.mxu1 %v18926_v46  ;;  %17176 = vmatprep.mubr.msk.f32.mxu1 %vm18506_vm1, %v18507_v43 }
 0x57b   : > { %17235 = vmatpush3.msra.mxu0 %v18923_v44  ;;  %17236 = vmatprep.mubr.msk.f32.mxu0 %vm18506_vm1, %v18507_v43 }
 0x57c   : > { %17179 = vmatprep.subr.mxu1 %v18507_v43  ;;  %17239 = vmatprep.subr.mxu0 %v18507_v43 }
 0x581   : > { %17177 = vmatmul.mubr.f32.vlgmr.msra.gmra.mrb[14].mxu1 %v19370_v49  ;;  %17237 = vmatmul.mubr.f32.vlgmr.msra.gmra.mrb[14].mxu0 %v19370_v49 }
 0x582   : > { %17180 = vmatpush3.msra.mxu1 %v18898_v29  ;;  %17181 = vmatprep.mubr.msk.f32.mxu1 %vm18506_vm1, %v18507_v43 }
 0x583   : > { %17240 = vmatpush3.msra.mxu0 %v18896_v28  ;;  %17241 = vmatprep.mubr.msk.f32.mxu0 %vm18506_vm1, %v18507_v43 }
 0x584   : > { %17887 = vmatprep.subr.bf16.mxu0 %v17886_v41 }
 0x589   : > { %17182 = vmatmul.mubr.f32.vlgmr.msra.gmra.mrb[14].mxu1 %v19370_v49  ;;  %17242 = vmatmul.mubr.f32.vlgmr.msra.gmra.mrb[14].mxu0 %v19370_v49  ;;  %v17902_v49 = vpack.c.bf16 %v10802_v32, %v10795_v30 }
 0x58a   : > { %17889 = vmatpush3.bf16.msra.mxu0 %v17886_v41  ;;  %17308 = vmatprep.mubr.f32.mxu0 %v18708_v26 }
 0x58b   : > { %17891 = vmatprep.subr.bf16.mxu0 %v17890_v0  ;;  %17246 = vmatprep.mubr.f32.mxu1 %v19077_v56 }
 0x58d   : > { %17309 = vmatmul.mubr.f32.vlgmr.msra.gmra.mrb[16].mxu0 %v18711_v27 }
 0x58e   : > { %17893 = vmatpush3.bf16.msra.mxu0 %v17890_v0  ;;  %17315 = vmatprep.mubr.f32.mxu0 %v18685_v7 }
 0x58f   : > { %17895 = vmatprep.subr.bf16.mxu0 %v17894_v2 }
 0x595   : > { %17316 = vmatmul.mubr.f32.vlgmr.msra.gmra.mrb[16].mxu0 %v18688_v10 }
 0x596   : > { %17897 = vmatpush3.bf16.msra.mxu0 %v17894_v2  ;;  %17322 = vmatprep.mubr.f32.mxu0 %v18691_v13 }
 0x597   : > { %17899 = vmatprep.subr.bf16.mxu0 %v17886_v41 }
 0x59d   : > { %17323 = vmatmul.mubr.f32.vlgmr.msra.gmra.mrb[16].mxu0 %v18694_v14 }
 0x59e   : > { %17901 = vmatpush3.bf16.msra.mxu0 %v17886_v41  ;;  %17329 = vmatprep.mubr.f32.mxu0 %v18697_v17 }
 0x59f   : > { %17903 = vmatprep.subr.bf16.mxu0 %v17902_v49 }
 0x5a5   : > { %17330 = vmatmul.mubr.f32.vlgmr.msra.gmra.mrb[16].mxu0 %v18700_v18 }
 0x5a6   : > { %17905 = vmatpush3.bf16.msra.mxu0 %v17902_v49  ;;  %17336 = vmatprep.mubr.f32.mxu0 %v18685_v7 }
 0x5a7   : > { %17907 = vmatprep.subr.bf16.mxu0 %v17886_v41 }
 0x5ad   : > { %17337 = vmatmul.mubr.f32.vlgmr.msra.gmra.mrb[16].mxu0 %v18688_v10 }
 0x5ae   : > { %17909 = vmatpush3.bf16.msra.mxu0 %v17886_v41  ;;  %17343 = vmatprep.mubr.f32.mxu0 %v18685_v7 }
 0x5af   : > { %17928 = vmatprep.subr.bf16.mxu0 %v18505_v39 }
 0x5b5   : > { %17344 = vmatmul.mubr.f32.vlgmr.msra.gmra.mrb[16].mxu0 %v18688_v10 }
 0x5b6   : > { %17930 = vmatpush3.bf16.msra.mxu0 %v18734_v38  ;;  %17392 = vmatprep.mubr.msk.f32.mxu0 %vm18506_vm1, %v18507_v43 }
 0x5b7   : > { %17931 = vmatprep.subr.bf16.mxu0 %v18505_v39 }
 0x602   : > { %v8370_v13 = vpop.f32.mrb[12].mxu1 }
 0x603   : > { %v17153_v14 = vpop.f32.mrb[13].mxu1 }
 0x65c   : > { %v8819_v17 = vpop.f32.mrb[14].mxu1  ;;  %v9712_v18 = vpop.f32.mrb[14].mxu0 }
 0x65d   : > { %v8823_v26 = vsub.f32 %v8370_v13, %v8819_v17  ;;  %v17183_v27 = vpop.f32.mrb[15].mxu1  ;;  %v17243_v6 = vpop.f32.mrb[15].mxu0  ;;  %v9716_v12 = vsub.f32 0.0, %v9712_v18 }
 0x65f   : > { %v9718_v11 = vand.u32 4294901760, %v8823_v26  ;;  %v10209_v15 = vand.u32 4294901760, %v9716_v12 }
 0x661   : > { %v9805_v7 = vsub.f32 %v8823_v26, %v9718_v11  ;;  %17244 = vmatprep.subr.mxu1 %v9718_v11  ;;  %v10296_v22 = vsub.f32 %v9716_v12, %v10209_v15  ;;  %v15978_v26 = vld [vmem:[%s19805_s8 + $0x10] sm:$0xff] }
 0x662   : > { %17245 = vmatpush3.msra.mxu1 %v9718_v11 }
 0x663   : > { %17247 = vmatmul.mubr.f32.vlgmr.msra.gmra.mrb[16].mxu1 %v19094_v19  ;;  %v9806_v10 = vand.u32 4294901760, %v9805_v7  ;;  %v10297_v23 = vand.u32 4294901760, %v10296_v22 }
 0x664   : > { %17251 = vmatprep.mubr.f32.mxu1 %v19067_v50 }
 0x665   : > { %v9807_v8 = vsub.f32 %v9805_v7, %v9806_v10  ;;  %v10298_v24 = vsub.f32 %v10296_v22, %v10297_v23 }
 0x667   : > { %v9808_v9 = vand.u32 4294901760, %v9807_v8  ;;  %v10299_v35 = vand.u32 4294901760, %v10298_v24 }
 0x669   : > { %17249 = vmatprep.subr.mxu1 %v9808_v9 }
 0x66a   : > { %17250 = vmatpush3.msra.mxu1 %v9808_v9 }
 0x66b   : > { %17252 = vmatmul.mubr.f32.vlgmr.msra.gmra.mrb[16].mxu1 %v19084_v3  ;;  %17254 = vmatprep.subr.mxu1 %v9805_v7 }
 0x66c   : > { %17255 = vmatpush3.msra.mxu1 %v9805_v7  ;;  %17256 = vmatprep.mubr.f32.mxu1 %v19070_v51 }
 0x66d   : > { %17259 = vmatprep.subr.mxu1 %v9718_v11 }
 0x673   : > { %17257 = vmatmul.mubr.f32.vlgmr.msra.gmra.mrb[16].mxu1 %v19087_v4 }
 0x674   : > { %17260 = vmatpush3.msra.mxu1 %v9718_v11  ;;  %17261 = vmatprep.mubr.f32.mxu1 %v19073_v53 }
 0x675   : > { %17264 = vmatprep.subr.mxu1 %v9806_v10 }
 0x67b   : > { %17262 = vmatmul.mubr.f32.vlgmr.msra.gmra.mrb[16].mxu1 %v19090_v5 }
 0x67c   : > { %17265 = vmatpush3.msra.mxu1 %v9806_v10  ;;  %17266 = vmatprep.mubr.f32.mxu1 %v19067_v50 }
 0x67d   : > { %17269 = vmatprep.subr.mxu1 %v9718_v11 }
 0x683   : > { %17267 = vmatmul.mubr.f32.vlgmr.msra.gmra.mrb[16].mxu1 %v19084_v3 }
 0x684   : > { %17270 = vmatpush3.msra.mxu1 %v9718_v11  ;;  %17271 = vmatprep.mubr.f32.mxu1 %v19067_v50 }
 0x685   : > { %17274 = vmatprep.subr.mxu1 %v10209_v15 }
 0x688   : > { %v17345_v25 = vpop.f32.mrb[16].mxu0 }
 0x689   : > { %v11670_v30 = vsel %vm405_vm0, %v17345_v25, 0  ;;  %v11197_v32 = vpop.f32.mrb[17].mxu0 }
 0x68a   : > { %v19458_v33 = vand.u32 4294901760, %v11670_v30  ;;  %v11208_v2 = vsel %vm405_vm0, %v11197_v32, 0 }
 0x68b   : > { %17272 = vmatmul.mubr.f32.vlgmr.msra.gmra.mrb[16].mxu1 %v19084_v3  ;;  %v19496_v49 = vand.u32 4294901760, %v11208_v2 }
 0x68c   : > { %v19462_v41 = vsub.f32 %v11670_v30, %v19458_v33  ;;  %17275 = vmatpush3.msra.mxu1 %v10209_v15  ;;  %17276 = vmatprep.mubr.f32.mxu1 %v19136_v1 }
 0x68d   : > { %17279 = vmatprep.subr.mxu1 %v10299_v35  ;;  %v19504_v13 = vsub.f32 %v11208_v2, %v19496_v49 }
 0x68e   : > { %v19466_v47 = vand.u32 4294901760, %v19462_v41 }
 0x68f   : > { %v19509_v14 = vand.u32 4294901760, %v19504_v13 }
 0x690   : > { %v11742_v55 = vsub.f32 %v19462_v41, %v19466_v47 }
 0x691   : > { %v11280_v17 = vsub.f32 %v19504_v13, %v19509_v14 }
 0x692   : > { %v19470_v0 = vand.u32 4294901760, %v11742_v55 }
 0x693   : > { %17277 = vmatmul.mubr.f32.vlgmr.msra.gmra.mrb[16].mxu1 %v19152_v16  ;;  %v11281_v18 = vand.u32 4294901760, %v11280_v17 }
 0x694   : > { %17280 = vmatpush3.msra.mxu1 %v10299_v35  ;;  %17393 = vmatmul.mubr.f32.vlgmr.msra.gmra.mrb[18].mxu0 %v19470_v0 }
 0x695   : > { %17284 = vmatprep.subr.mxu1 %v10296_v22  ;;  %17933 = vmatpush3.bf16.msra.mxu0 %v18748_v58 }
 0x696   : > { %17281 = vmatprep.mubr.f32.mxu1 %v19106_v31  ;;  %17399 = vmatprep.mubr.msk.f32.mxu0 %vm18506_vm1, %v18507_v43 }
 0x697   : > { %17934 = vmatprep.subr.bf16.mxu0 %v18505_v39 }
 0x69b   : > { %17282 = vmatmul.mubr.f32.vlgmr.msra.gmra.mrb[16].mxu1 %v19120_v42 }
 0x69c   : > { %17285 = vmatpush3.msra.mxu1 %v10296_v22  ;;  %17400 = vmatmul.mubr.f32.vlgmr.msra.gmra.mrb[18].mxu0 %v19458_v33 }
 0x69d   : > { %17289 = vmatprep.subr.mxu1 %v10209_v15  ;;  %17936 = vmatpush3.bf16.msra.mxu0 %v18752_v60 }
 0x69e   : > { %17286 = vmatprep.mubr.f32.mxu1 %v19116_v34  ;;  %17406 = vmatprep.mubr.msk.f32.mxu0 %vm18506_vm1, %v18507_v43 }
 0x69f   : > { %17937 = vmatprep.subr.bf16.mxu0 %v18505_v39 }
 0x6a3   : > { %17287 = vmatmul.mubr.f32.vlgmr.msra.gmra.mrb[16].mxu1 %v19127_v48 }
 0x6a4   : > { %17290 = vmatpush3.msra.mxu1 %v10209_v15  ;;  %17407 = vmatmul.mubr.f32.vlgmr.msra.gmra.mrb[18].mxu0 %v19462_v41 }
 0x6a5   : > { %17294 = vmatprep.subr.mxu1 %v10297_v23  ;;  %17939 = vmatpush3.bf16.msra.mxu0 %v18734_v38 }
 0x6a6   : > { %17291 = vmatprep.mubr.f32.mxu1 %v19123_v45  ;;  %17413 = vmatprep.mubr.msk.f32.mxu0 %vm18506_vm1, %v18507_v43 }
 0x6a7   : > { %17940 = vmatprep.subr.bf16.mxu0 %v18505_v39 }
 0x6ab   : > { %17292 = vmatmul.mubr.f32.vlgmr.msra.gmra.mrb[16].mxu1 %v19134_v57 }
 0x6ac   : > { %17295 = vmatpush3.msra.mxu1 %v10297_v23  ;;  %17414 = vmatmul.mubr.f32.vlgmr.msra.gmra.mrb[18].mxu0 %v19466_v47 }
 0x6ad   : > { %17299 = vmatprep.subr.mxu1 %v10209_v15  ;;  %17942 = vmatpush3.bf16.msra.mxu0 %v18756_v62 }
 0x6ae   : > { %17296 = vmatprep.mubr.f32.mxu1 %v19106_v31  ;;  %17420 = vmatprep.mubr.msk.f32.mxu0 %vm18506_vm1, %v18507_v43 }
 0x6af   : > { %17943 = vmatprep.subr.bf16.mxu0 %v18505_v39 }
 0x6b3   : > { %17297 = vmatmul.mubr.f32.vlgmr.msra.gmra.mrb[16].mxu1 %v19120_v42 }
 0x6b4   : > { %17300 = vmatpush3.msra.mxu1 %v10209_v15  ;;  %17421 = vmatmul.mubr.f32.vlgmr.msra.gmra.mrb[18].mxu0 %v19458_v33 }
 0x6b5   : > { %17945 = vmatpush3.bf16.msra.mxu0 %v18734_v38  ;;  %17301 = vmatprep.mubr.f32.mxu1 %v19106_v31 }
 0x6b6   : > { %17910 = vmatprep.subr.bf16.mxu1 %v18505_v39  ;;  %17427 = vmatprep.mubr.msk.f32.mxu0 %vm18506_vm1, %v18507_v43 }
 0x6b7   : > { %17514 = vmatprep.subr.mxu0 %v18507_v43 }
 0x6bb   : > { %17302 = vmatmul.mubr.f32.vlgmr.msra.gmra.mrb[16].mxu1 %v19120_v42 }
 0x6bc   : > { %17912 = vmatpush3.bf16.msra.mxu1 %v18738_v40  ;;  %17428 = vmatmul.mubr.f32.vlgmr.msra.gmra.mrb[18].mxu0 %v19458_v33 }
 0x6bd   : > { %17350 = vmatprep.mubr.msk.f32.mxu1 %vm18506_vm1, %v18507_v43  ;;  %17913 = vmatprep.subr.bf16.mxu1 %v18505_v39 }
 0x6be   : > { %17515 = vmatpush3.msra.mxu0 %v18896_v28  ;;  %17516 = vmatprep.mubr.msk.f32.mxu0 %vm18506_vm1, %v18507_v43 }
 0x6bf   : > { %17351 = vmatmul.mubr.f32.vlgmr.msra.gmra.mrb[18].mxu1 %v11281_v18  ;;  %17519 = vmatprep.subr.mxu0 %v18507_v43 }
 0x6c0   : > { %17915 = vmatpush3.bf16.msra.mxu1 %v18750_v59  ;;  %17357 = vmatprep.mubr.msk.f32.mxu1 %vm18506_vm1, %v18507_v43 }
 0x6c1   : > { %17916 = vmatprep.subr.bf16.mxu1 %v18505_v39 }
 0x6c7   : > { %17358 = vmatmul.mubr.f32.vlgmr.msra.gmra.mrb[18].mxu1 %v19496_v49 }
 0x6c8   : > { %17918 = vmatpush3.bf16.msra.mxu1 %v18754_v61  ;;  %17364 = vmatprep.mubr.msk.f32.mxu1 %vm18506_vm1, %v18507_v43 }
 0x6c9   : > { %17919 = vmatprep.subr.bf16.mxu1 %v18505_v39 }
 0x6cf   : > { %17365 = vmatmul.mubr.f32.vlgmr.msra.gmra.mrb[18].mxu1 %v19504_v13 }
 0x6d0   : > { %17921 = vmatpush3.bf16.msra.mxu1 %v18738_v40  ;;  %17371 = vmatprep.mubr.msk.f32.mxu1 %vm18506_vm1, %v18507_v43 }
 0x6d1   : > { %17922 = vmatprep.subr.bf16.mxu1 %v18505_v39 }
 0x6d7   : > { %17372 = vmatmul.mubr.f32.vlgmr.msra.gmra.mrb[18].mxu1 %v19509_v14 }
 0x6d8   : > { %17924 = vmatpush3.bf16.msra.mxu1 %v18758_v63  ;;  %17378 = vmatprep.mubr.msk.f32.mxu1 %vm18506_vm1, %v18507_v43 }
 0x6d9   : > { %17925 = vmatprep.subr.bf16.mxu1 %v18505_v39 }
 0x6df   : > { %17379 = vmatmul.mubr.f32.vlgmr.msra.gmra.mrb[18].mxu1 %v19496_v49 }
 0x6e0   : > { %17927 = vmatpush3.bf16.msra.mxu1 %v18738_v40  ;;  %17385 = vmatprep.mubr.msk.f32.mxu1 %vm18506_vm1, %v18507_v43 }
 0x6e1   : > { %17946 = vmatprep.subr.bf16.mxu1 %v18505_v39 }
 0x6e7   : > { %17386 = vmatmul.mubr.f32.vlgmr.msra.gmra.mrb[18].mxu1 %v19496_v49 }
 0x6e8   : > { %17948 = vmatpush3.bf16.msra.mxu1 %v18738_v40  ;;  %17434 = vmatprep.mubr.msk.f32.mxu1 %vm18506_vm1, %v18507_v43 }
 0x6e9   : > { %17949 = vmatprep.subr.bf16.mxu1 %v18505_v39 }
 0x6eb   : > { %17435 = vmatmul.mubr.f32.vlgmr.msra.gmra.mrb[20].mxu1 %v19470_v0 }
 0x6ec   : > { %17951 = vmatpush3.bf16.msra.mxu1 %v18750_v59  ;;  %17441 = vmatprep.mubr.msk.f32.mxu1 %vm18506_vm1, %v18507_v43 }
 0x6ed   : > { %17952 = vmatprep.subr.bf16.mxu1 %v18505_v39 }
 0x6f3   : > { %17442 = vmatmul.mubr.f32.vlgmr.msra.gmra.mrb[20].mxu1 %v19458_v33 }
 0x6f4   : > { %17954 = vmatpush3.bf16.msra.mxu1 %v18754_v61  ;;  %17448 = vmatprep.mubr.msk.f32.mxu1 %vm18506_vm1, %v18507_v43 }
 0x6f5   : > { %17955 = vmatprep.subr.bf16.mxu1 %v18505_v39 }
 0x6fb   : > { %17449 = vmatmul.mubr.f32.vlgmr.msra.gmra.mrb[20].mxu1 %v19462_v41 }
 0x6fc   : > { %17957 = vmatpush3.bf16.msra.mxu1 %v18738_v40  ;;  %17455 = vmatprep.mubr.msk.f32.mxu1 %vm18506_vm1, %v18507_v43 }
 0x6fd   : > { %17958 = vmatprep.subr.bf16.mxu1 %v18505_v39 }
 0x703   : > { %17456 = vmatmul.mubr.f32.vlgmr.msra.gmra.mrb[20].mxu1 %v19466_v47 }
 0x704   : > { %17960 = vmatpush3.bf16.msra.mxu1 %v18758_v63  ;;  %17462 = vmatprep.mubr.msk.f32.mxu1 %vm18506_vm1, %v18507_v43 }
 0x705   : > { %17961 = vmatprep.subr.bf16.mxu1 %v18505_v39 }
 0x70b   : > { %17463 = vmatmul.mubr.f32.vlgmr.msra.gmra.mrb[20].mxu1 %v19458_v33 }
 0x70c   : > { %17963 = vmatpush3.bf16.msra.mxu1 %v18738_v40  ;;  %17469 = vmatprep.mubr.msk.f32.mxu1 %vm18506_vm1, %v18507_v43  ;;  %v18402_v40 = vld [vmem:[%s18670_s26 + $0x18] sm:$0xff] }
 0x70d   : > { %17964 = vmatprep.subr.bf16.mxu1 %v18505_v39 }
 0x713   : > { %17470 = vmatmul.mubr.f32.vlgmr.msra.gmra.mrb[20].mxu1 %v19458_v33 }
 0x714   : > { %17966 = vmatpush3.bf16.msra.mxu1 %v18734_v38  ;;  %17476 = vmatprep.mubr.msk.f32.mxu1 %vm18506_vm1, %v18507_v43 }
 0x715   : > { %17967 = vmatprep.subr.bf16.mxu1 %v18505_v39 }
 0x71b   : > { %17477 = vmatmul.mubr.f32.vlgmr.msra.gmra.mrb[20].mxu1 %v11281_v18 }
 0x71c   : > { %17969 = vmatpush3.bf16.msra.mxu1 %v18748_v58  ;;  %17483 = vmatprep.mubr.msk.f32.mxu1 %vm18506_vm1, %v18507_v43 }
 0x71d   : > { %17970 = vmatprep.subr.bf16.mxu1 %v18505_v39 }
 0x723   : > { %17484 = vmatmul.mubr.f32.vlgmr.msra.gmra.mrb[20].mxu1 %v19496_v49 }
 0x724   : > { %17972 = vmatpush3.bf16.msra.mxu1 %v18752_v60  ;;  %17490 = vmatprep.mubr.msk.f32.mxu1 %vm18506_vm1, %v18507_v43  ;;  %v18403_v60 = vld [vmem:[%s18670_s26 + $0x10] sm:$0xff]  ;;  %s15862_s26 = sshll.u32 %s19311_s22, 4  ;;  %s19742_s26 = int_to_ptr.vmem [resolvable:$true] %s15862_s26 }
 0x725   : > { %17973 = vmatprep.subr.bf16.mxu1 %v18505_v39  ;;  %s18434_s18 = scalar_lea.vmem %s19742_s26, 768  ;;  %p18441_p10 = scmp.lt.s32.totalorder %s19742_s26, %s18439_s19 }
 0x726   : > { %p18435_p11 = scmp.ne.s32.totalorder %s19742_s26, %s18434_s18  ;;  %p18442_p0 = scmp.lt.s32.totalorder %s18440_s30, %s18434_s18 }
 0x728   : > { %p18436_p13 = pnand %p18435_p11, %p19819_p12  ;;  %p18443_p2 = por %p18442_p0, %p18441_p10 }
 0x72a   : > { %p18437_p8 = pneg %p18436_p13 }
 0x72b   : > { %17491 = vmatmul.mubr.f32.vlgmr.msra.gmra.mrb[20].mxu1 %v19504_v13 }
 0x72c   : > { %17975 = vmatpush3.bf16.msra.mxu1 %v18734_v38  ;;  %17497 = vmatprep.mubr.msk.f32.mxu1 %vm18506_vm1, %v18507_v43  ;;  %p18444_p4 = pnand %p18443_p2, %p18437_p8 }
 0x72d   : > { %17976 = vmatprep.subr.bf16.mxu1 %v18505_v39 }
 0x733   : > { %17498 = vmatmul.mubr.f32.vlgmr.msra.gmra.mrb[20].mxu1 %v19509_v14 }
 0x734   : > { %17978 = vmatpush3.bf16.msra.mxu1 %v18756_v62  ;;  %17504 = vmatprep.mubr.msk.f32.mxu1 %vm18506_vm1, %v18507_v43 }
 0x735   : > { %17979 = vmatprep.subr.bf16.mxu1 %v18505_v39 }
 0x73b   : > { %17505 = vmatmul.mubr.f32.vlgmr.msra.gmra.mrb[20].mxu1 %v19496_v49 }
 0x73c   : > { %17981 = vmatpush3.bf16.msra.mxu1 %v18734_v38  ;;  %17511 = vmatprep.mubr.msk.f32.mxu1 %vm18506_vm1, %v18507_v43 }
 0x73d   : > { %17574 = vmatprep.subr.mxu1 %v18507_v43 }
 0x743   : > { %17512 = vmatmul.mubr.f32.vlgmr.msra.gmra.mrb[20].mxu1 %v19496_v49 }
 0x744   : > { %17575 = vmatpush3.msra.mxu1 %v18898_v29  ;;  %17576 = vmatprep.mubr.msk.f32.mxu1 %vm18506_vm1, %v18507_v43 }
 0x745   : > { %17579 = vmatprep.subr.mxu1 %v18507_v43 }
 0x78e   : > { %v17303_v39 = vpop.f32.mrb[16].mxu1 }
 0x78f   : > { %v17986_v58 = vadd.f32 %v18402_v40, %v17303_v39  ;;  %v10687_v59 = vpop.f32.mrb[17].mxu1  ;;  %v12127_v38 = vpop.f32.mrb[18].mxu0 }
 0x790   : > { %v17987_v61 = vadd.f32 %v18403_v60, %v10687_v59  ;;  %v17429_v62 = vpop.f32.mrb[19].mxu0 }
 0x791   : > { %15974 = vst.msk [vmem:[%s19311_s22 + $0x18] sm:$0xff] %vm405_vm0, %v17986_v58 }
 0x792   : > { %15973 = vst.msk [vmem:[%s19311_s22 + $0x10] sm:$0xff] %vm405_vm0, %v17987_v61 }
 0x7ba   : > { %v11665_v63 = vpop.f32.mrb[18].mxu1 }
 0x7bb   : > { %v12131_v27 = vsub.f32 %v11665_v63, %v12127_v38  ;;  %v17387_v6 = vpop.f32.mrb[19].mxu1 }
 0x7bd   : > { %v13064_v11 = vmul.f32 %v15978_v26, %v12131_v27  ;;  %v13050_v23 = vmul.f32 %v12131_v27, %v12131_v27 }
 0x7bf   : > { %v13067_v7 = vsel %vm2772_vm2, %v13064_v11, 0 }
 0x7c0   : > { %v13135_v10 = vand.u32 4294901760, %v13067_v7 }
 0x7c2   : > { %v13136_v8 = vsub.f32 %v13067_v7, %v13135_v10 }
 0x7c4   : > { %v13137_v9 = vand.u32 4294901760, %v13136_v8 }
 0x7c6   : > { %v13138_v12 = vsub.f32 %v13136_v8, %v13137_v9 }
 0x7c8   : > { %v13139_v15 = vand.u32 4294901760, %v13138_v12 }
 0x7ca   : > { %17517 = vmatmul.mubr.f32.vlgmr.msra.gmra.mrb[20].mxu0 %v13139_v15  ;;  %17577 = vmatmul.mubr.f32.vlgmr.msra.gmra.mrb[22].mxu1 %v13139_v15 }
 0x7cb   : > { %17520 = vmatpush3.msra.mxu0 %v18932_v52  ;;  %17521 = vmatprep.mubr.msk.f32.mxu0 %vm18506_vm1, %v18507_v43 }
 0x7cc   : > { %17580 = vmatpush3.msra.mxu1 %v18934_v54  ;;  %17581 = vmatprep.mubr.msk.f32.mxu1 %vm18506_vm1, %v18507_v43 }
 0x7cd   : > { %17524 = vmatprep.subr.mxu0 %v18507_v43  ;;  %17584 = vmatprep.subr.mxu1 %v18507_v43 }
 0x7d2   : > { %17522 = vmatmul.mubr.f32.vlgmr.msra.gmra.mrb[20].mxu0 %v13135_v10  ;;  %17582 = vmatmul.mubr.f32.vlgmr.msra.gmra.mrb[22].mxu1 %v13135_v10 }
 0x7d3   : > { %17525 = vmatpush3.msra.mxu0 %v18914_v36  ;;  %17526 = vmatprep.mubr.msk.f32.mxu0 %vm18506_vm1, %v18507_v43 }
 0x7d4   : > { %17585 = vmatpush3.msra.mxu1 %v18917_v37  ;;  %17586 = vmatprep.mubr.msk.f32.mxu1 %vm18506_vm1, %v18507_v43 }
 0x7d5   : > { %17529 = vmatprep.subr.mxu0 %v18507_v43  ;;  %17589 = vmatprep.subr.mxu1 %v18507_v43 }
 0x7da   : > { %17527 = vmatmul.mubr.f32.vlgmr.msra.gmra.mrb[20].mxu0 %v13136_v8  ;;  %17587 = vmatmul.mubr.f32.vlgmr.msra.gmra.mrb[22].mxu1 %v13136_v8 }
 0x7db   : > { %17530 = vmatpush3.msra.mxu0 %v18896_v28  ;;  %17531 = vmatprep.mubr.msk.f32.mxu0 %vm18506_vm1, %v18507_v43 }
 0x7dc   : > { %17590 = vmatpush3.msra.mxu1 %v18898_v29  ;;  %17591 = vmatprep.mubr.msk.f32.mxu1 %vm18506_vm1, %v18507_v43 }
 0x7dd   : > { %17534 = vmatprep.subr.mxu0 %v18507_v43  ;;  %17594 = vmatprep.subr.mxu1 %v18507_v43 }
 0x7e2   : > { %17532 = vmatmul.mubr.f32.vlgmr.msra.gmra.mrb[20].mxu0 %v13137_v9  ;;  %17592 = vmatmul.mubr.f32.vlgmr.msra.gmra.mrb[22].mxu1 %v13137_v9 }
 0x7e3   : > { %17535 = vmatpush3.msra.mxu0 %v18923_v44  ;;  %17536 = vmatprep.mubr.msk.f32.mxu0 %vm18506_vm1, %v18507_v43 }
 0x7e4   : > { %17595 = vmatpush3.msra.mxu1 %v18926_v46  ;;  %17596 = vmatprep.mubr.msk.f32.mxu1 %vm18506_vm1, %v18507_v43 }
 0x7e5   : > { %17539 = vmatprep.subr.mxu0 %v18507_v43  ;;  %17599 = vmatprep.subr.mxu1 %v18507_v43 }
 0x7ea   : > { %17537 = vmatmul.mubr.f32.vlgmr.msra.gmra.mrb[20].mxu0 %v13135_v10  ;;  %17597 = vmatmul.mubr.f32.vlgmr.msra.gmra.mrb[22].mxu1 %v13135_v10 }
 0x7eb   : > { %17540 = vmatpush3.msra.mxu0 %v18896_v28  ;;  %17541 = vmatprep.mubr.msk.f32.mxu0 %vm18506_vm1, %v18507_v43 }
 0x7ec   : > { %17600 = vmatpush3.msra.mxu1 %v18898_v29  ;;  %17601 = vmatprep.mubr.msk.f32.mxu1 %vm18506_vm1, %v18507_v43 }
 0x7ed   : > { %17544 = vmatprep.subr.mxu0 %v18507_v43  ;;  %17604 = vmatprep.subr.mxu1 %v18507_v43 }
 0x7f2   : > { %17542 = vmatmul.mubr.f32.vlgmr.msra.gmra.mrb[20].mxu0 %v13135_v10  ;;  %17602 = vmatmul.mubr.f32.vlgmr.msra.gmra.mrb[22].mxu1 %v13135_v10 }
 0x7f3   : > { %17545 = vmatpush3.msra.mxu0 %v18898_v29  ;;  %17546 = vmatprep.mubr.msk.f32.mxu0 %vm18506_vm1, %v18507_v43 }
 0x7f4   : > { %17605 = vmatpush3.msra.mxu1 %v18896_v28  ;;  %17606 = vmatprep.mubr.msk.f32.mxu1 %vm18506_vm1, %v18507_v43 }
 0x7f5   : > { %17549 = vmatprep.subr.mxu0 %v18507_v43  ;;  %17609 = vmatprep.subr.mxu1 %v18507_v43 }
 0x816   : > { %v13046_v22 = vpop.f32.mrb[20].mxu1 }
 0x817   : > { %v13051_v24 = vmul.f32 %v13046_v22, %v13046_v22  ;;  %v13065_v25 = vmul.f32 %v15978_v26, %v13046_v22  ;;  %v17513_v30 = vpop.f32.mrb[21].mxu1 }
 0x819   : > { %v13052_v32 = vadd.f32 %v13051_v24, %v13050_v23  ;;  %v13516_v33 = vsel %vm2772_vm2, %v13065_v25, 0 }
 0x81a   : > { %v13584_v35 = vand.u32 4294901760, %v13516_v33 }
 0x81b   : > { %18398 = vrsqrt.f32 %v13052_v32  ;;  %vm13055_vm8 = vcmp.eq.f32.partialorder %v13052_v32, inf  ;;  %v13058_v13 = vand.u32 2147483648, %v13052_v32  ;;  %vm13057_vm9 = vcmp.eq.f32.partialorder %v13052_v32, 0.0 }
 0x81c   : > { %v13585_v41 = vsub.f32 %v13516_v33, %v13584_v35 }
 0x81e   : > { %v13586_v47 = vand.u32 4294901760, %v13585_v41 }
 0x820   : > { %v13587_v55 = vsub.f32 %v13585_v41, %v13586_v47 }
 0x822   : > { %v13588_v0 = vand.u32 4294901760, %v13587_v55 }
 0x824   : > { %17547 = vmatmul.mubr.f32.vlgmr.msra.gmra.mrb[22].mxu0 %v13588_v0  ;;  %17607 = vmatmul.mubr.f32.vlgmr.msra.gmra.mrb[22].mxu1 %v13588_v0 }
 0x825   : > { %v18399_v2 = vpop.eup %18398  ;;  %17550 = vmatpush3.msra.mxu0 %v18934_v54  ;;  %17551 = vmatprep.mubr.msk.f32.mxu0 %vm18506_vm1, %v18507_v43 }
 0x826   : > { %v13054_v49 = vmul.f32 %v18399_v2, %v13052_v32  ;;  %17610 = vmatpush3.msra.mxu1 %v18932_v52  ;;  %17611 = vmatprep.mubr.msk.f32.mxu1 %vm18506_vm1, %v18507_v43 }
 0x827   : > { %17554 = vmatprep.subr.mxu0 %v18507_v43  ;;  %17614 = vmatprep.subr.mxu1 %v18507_v43 }
 0x828   : > { %v13056_v14 = vsel %vm13055_vm8, %v13052_v32, %v13054_v49 }
 0x829   : > { %v13059_v17 = vsel %vm13057_vm9, %v13058_v13, %v13056_v14 }
 0x82a   : > { %15977 = vst.msk [vmem:[%s19002_s11 + $0x4] sm:$0x3] %vm2767_vm4, %v13059_v17  ;;  %s18340_s11 = smul.u32 768, %s18587_s17  ;;  %s15844_s17 = scalar_lea.sflag [#allocation4], %s18664_s27 }
 0x82c   : > { %17552 = vmatmul.mubr.f32.vlgmr.msra.gmra.mrb[22].mxu0 %v13584_v35  ;;  %17612 = vmatmul.mubr.f32.vlgmr.msra.gmra.mrb[22].mxu1 %v13584_v35  ;;  %s19749_s28 = scalar_lea.hbm %s19806_s9, %s18340_s11 }
 0x82d   : > { %17555 = vmatpush3.msra.mxu0 %v18917_v37  ;;  %17556 = vmatprep.mubr.msk.f32.mxu0 %vm18506_vm1, %v18507_v43 }
 0x82e   : > { %17615 = vmatpush3.msra.mxu1 %v18914_v36  ;;  %17616 = vmatprep.mubr.msk.f32.mxu1 %vm18506_vm1, %v18507_v43 }
 0x82f   : > { %17559 = vmatprep.subr.mxu0 %v18507_v43  ;;  %17619 = vmatprep.subr.mxu1 %v18507_v43 }
 0x834   : > { %17557 = vmatmul.mubr.f32.vlgmr.msra.gmra.mrb[22].mxu0 %v13585_v41  ;;  %17617 = vmatmul.mubr.f32.vlgmr.msra.gmra.mrb[22].mxu1 %v13585_v41 }
 0x835   : > { %17560 = vmatpush3.msra.mxu0 %v18898_v29  ;;  %17561 = vmatprep.mubr.msk.f32.mxu0 %vm18506_vm1, %v18507_v43 }
 0x836   : > { %17620 = vmatpush3.msra.mxu1 %v18896_v28  ;;  %17621 = vmatprep.mubr.msk.f32.mxu1 %vm18506_vm1, %v18507_v43 }
 0x837   : > { %17564 = vmatprep.subr.mxu0 %v18507_v43  ;;  %17624 = vmatprep.subr.mxu1 %v18507_v43 }
 0x83c   : > { %17562 = vmatmul.mubr.f32.vlgmr.msra.gmra.mrb[22].mxu0 %v13586_v47  ;;  %17622 = vmatmul.mubr.f32.vlgmr.msra.gmra.mrb[22].mxu1 %v13586_v47 }
 0x83d   : > { %17565 = vmatpush3.msra.mxu0 %v18926_v46  ;;  %17566 = vmatprep.mubr.msk.f32.mxu0 %vm18506_vm1, %v18507_v43 }
 0x83e   : > { %17625 = vmatpush3.msra.mxu1 %v18923_v44  ;;  %17626 = vmatprep.mubr.msk.f32.mxu1 %vm18506_vm1, %v18507_v43 }
 0x83f   : > { %17569 = vmatprep.subr.mxu0 %v18507_v43  ;;  %17629 = vmatprep.subr.mxu1 %v18507_v43 }
 0x844   : > { %17567 = vmatmul.mubr.f32.vlgmr.msra.gmra.mrb[22].mxu0 %v13584_v35  ;;  %17627 = vmatmul.mubr.f32.vlgmr.msra.gmra.mrb[22].mxu1 %v13584_v35 }
 0x845   : > { %17570 = vmatpush3.msra.mxu0 %v18898_v29  ;;  %17571 = vmatprep.mubr.msk.f32.mxu0 %vm18506_vm1, %v18507_v43 }
 0x846   : > { %17630 = vmatpush3.msra.mxu1 %v18896_v28  ;;  %17631 = vmatprep.mubr.msk.f32.mxu1 %vm18506_vm1, %v18507_v43 }
 0x84c   : > { %17572 = vmatmul.mubr.f32.vlgmr.msra.gmra.mrb[22].mxu0 %v13584_v35  ;;  %17632 = vmatmul.mubr.f32.vlgmr.msra.gmra.mrb[22].mxu1 %v13584_v35 }
 0x84d   : > { %17636 = vmatprep.mubr.f32.mxu0 %v19077_v56 }
 0x8c5   : > { %v13511_v36 = vpop.f32.mrb[20].mxu0 }
 0x8c6   : > { %v17543_v37 = vpop.f32.mrb[21].mxu0 }
 0x91f   : > { %v13960_v44 = vpop.f32.mrb[22].mxu0  ;;  %v14853_v46 = vpop.f32.mrb[22].mxu1 }
 0x920   : > { %v13964_v52 = vsub.f32 %v13511_v36, %v13960_v44  ;;  %v17573_v54 = vpop.f32.mrb[23].mxu0  ;;  %v17633_v18 = vpop.f32.mrb[23].mxu1  ;;  %v14857_v56 = vsub.f32 0.0, %v14853_v46 }
 0x922   : > { %v14859_v29 = vand.u32 4294901760, %v13964_v52 }
 0x924   : > { %v14946_v39 = vsub.f32 %v13964_v52, %v14859_v29  ;;  %17634 = vmatprep.subr.mxu0 %v14859_v29 }
 0x925   : > { %17635 = vmatpush3.msra.mxu0 %v14859_v29 }
 0x926   : > { %17637 = vmatmul.mubr.f32.vlgmr.msra.gmra.mrb[24].mxu0 %v19094_v19  ;;  %v14947_v28 = vand.u32 4294901760, %v14946_v39  ;;  %v15350_v19 = vand.u32 4294901760, %v14857_v56 }
 0x927   : > { %17641 = vmatprep.mubr.f32.mxu0 %v19067_v50 }
 0x928   : > { %v14948_v43 = vsub.f32 %v14946_v39, %v14947_v28  ;;  %v15437_v58 = vsub.f32 %v14857_v56, %v15350_v19 }
 0x92a   : > { %v14949_v40 = vand.u32 4294901760, %v14948_v43  ;;  %v15438_v59 = vand.u32 4294901760, %v15437_v58 }
 0x92c   : > { %17639 = vmatprep.subr.mxu0 %v14949_v40 }
 0x92d   : > { %17640 = vmatpush3.msra.mxu0 %v14949_v40 }
 0x92e   : > { %17642 = vmatmul.mubr.f32.vlgmr.msra.gmra.mrb[24].mxu0 %v19084_v3  ;;  %17644 = vmatprep.subr.mxu0 %v14946_v39 }
 0x92f   : > { %17645 = vmatpush3.msra.mxu0 %v14946_v39  ;;  %17646 = vmatprep.mubr.f32.mxu0 %v19070_v51  ;;  %v15439_v51 = vsub.f32 %v15437_v58, %v15438_v59 }
 0x930   : > { %17649 = vmatprep.subr.mxu0 %v14859_v29 }
 0x936   : > { %17647 = vmatmul.mubr.f32.vlgmr.msra.gmra.mrb[24].mxu0 %v19087_v4 }
 0x937   : > { %17650 = vmatpush3.msra.mxu0 %v14859_v29  ;;  %17651 = vmatprep.mubr.f32.mxu0 %v19073_v53  ;;  %v15440_v53 = vand.u32 4294901760, %v15439_v51 }
 0x938   : > { %17654 = vmatprep.subr.mxu0 %v14947_v28 }
 0x93e   : > { %17652 = vmatmul.mubr.f32.vlgmr.msra.gmra.mrb[24].mxu0 %v19090_v5 }
 0x93f   : > { %17655 = vmatpush3.msra.mxu0 %v14947_v28  ;;  %17656 = vmatprep.mubr.f32.mxu0 %v19067_v50 }
 0x940   : > { %17659 = vmatprep.subr.mxu0 %v14859_v29 }
 0x946   : > { %17657 = vmatmul.mubr.f32.vlgmr.msra.gmra.mrb[24].mxu0 %v19084_v3 }
 0x947   : > { %17660 = vmatpush3.msra.mxu0 %v14859_v29  ;;  %17661 = vmatprep.mubr.f32.mxu0 %v19067_v50 }
 0x948   : > { %17664 = vmatprep.subr.mxu0 %v15350_v19 }
 0x94e   : > { %17662 = vmatmul.mubr.f32.vlgmr.msra.gmra.mrb[24].mxu0 %v19084_v3 }
 0x94f   : > { %17665 = vmatpush3.msra.mxu0 %v15350_v19  ;;  %17666 = vmatprep.mubr.f32.mxu0 %v19136_v1 }
 0x950   : > { %17669 = vmatprep.subr.mxu0 %v15440_v53 }
 0x956   : > { %17667 = vmatmul.mubr.f32.vlgmr.msra.gmra.mrb[24].mxu0 %v19152_v16 }
 0x957   : > { %17670 = vmatpush3.msra.mxu0 %v15440_v53  ;;  %17671 = vmatprep.mubr.f32.mxu0 %v19106_v31 }
 0x958   : > { %17674 = vmatprep.subr.mxu0 %v15437_v58 }
 0x95e   : > { %17672 = vmatmul.mubr.f32.vlgmr.msra.gmra.mrb[24].mxu0 %v19120_v42 }
 0x95f   : > { %17675 = vmatpush3.msra.mxu0 %v15437_v58  ;;  %17676 = vmatprep.mubr.f32.mxu0 %v19116_v34 }
 0x960   : > { %17679 = vmatprep.subr.mxu0 %v15350_v19 }
 0x966   : > { %17677 = vmatmul.mubr.f32.vlgmr.msra.gmra.mrb[24].mxu0 %v19127_v48 }
 0x967   : > { %17680 = vmatpush3.msra.mxu0 %v15350_v19  ;;  %17681 = vmatprep.mubr.f32.mxu0 %v19123_v45 }
 0x968   : > { %17684 = vmatprep.subr.mxu0 %v15438_v59 }
 0x96e   : > { %17682 = vmatmul.mubr.f32.vlgmr.msra.gmra.mrb[24].mxu0 %v19134_v57 }
 0x96f   : > { %17685 = vmatpush3.msra.mxu0 %v15438_v59  ;;  %17686 = vmatprep.mubr.f32.mxu0 %v19106_v31 }
 0x970   : > { %17689 = vmatprep.subr.mxu0 %v15350_v19 }
 0x976   : > { %17687 = vmatmul.mubr.f32.vlgmr.msra.gmra.mrb[24].mxu0 %v19120_v42 }
 0x977   : > { %17690 = vmatpush3.msra.mxu0 %v15350_v19  ;;  %17691 = vmatprep.mubr.f32.mxu0 %v19106_v31 }
 0x97e   : > { %17692 = vmatmul.mubr.f32.vlgmr.msra.gmra.mrb[24].mxu0 %v19120_v42 }
 0xa51   : > { %v17693_v50 = vpop.f32.mrb[24].mxu0 }
 0xa52   : > { %v17988_v3 = vadd.f32 %v17693_v50, %v19397_v21  ;;  %v15828_v4 = vpop.f32.mrb[25].mxu0 }
 0xa53   : > { %v17989_v5 = vadd.f32 %v19394_v20, %v15828_v4 }
 0xa54   : > { %15980 = vst.msk [vmem:[%s19311_s22 + $0x28] sm:$0xff] %vm405_vm0, %v17988_v3 }
 0xa55   : > { %15979 = vst.msk [vmem:[%s19311_s22 + $0x20] sm:$0xff] %vm405_vm0, %v17989_v5 }
 0xa56   : > { %18447 = shalt.err (!%p18444_p4)
}
 0xa57   : > { %s18448_s22 = scalar_lea.hbm %s19749_s28, 768  ;;  %s18452_s20 = scalar_lea.hbm %s19806_s9, 1536 }
 0xa58   : > { %p18449_p5 = scmp.ne.s32.totalorder %s19749_s28, %s18448_s22  ;;  %p18453_p1 = scmp.lt.u32.totalorder %s19749_s28, %s19806_s9 }
 0xa59   : > { %p18454_p3 = scmp.lt.u32.totalorder %s18452_s20, %s18448_s22  ;;  %p18456_p11 = scmp.lt.u32.totalorder %s18448_s22, %s19749_s28 }
 0xa5a   : > { %p18450_p7 = pnand %p18449_p5, %p19819_p12 }
 0xa5b   : > { %p18455_p6 = por %p18454_p3, %p18453_p1 }
 0xa5c   : > { %p18451_p9 = pneg %p18450_p7 }
 0xa5d   : > { %p18457_p13 = por %p18456_p11, %p18455_p6 }
 0xa5f   : > { %p18458_p8 = pnand %p18457_p13, %p18451_p9 }
 0xa61   : > { %18461 = shalt.err (!%p18458_p8)
}
 0xa62   : > { %s18509_s23 = smov 128   ;;  %s18510_s18 = smov 8  }
 0xa63   : > { %18343 = dma.vmem_to_hbm [thread:$0]  (%p19819_p12), %s19742_s26, 768, %s19749_s28, %s15844_s17, %s18509_s23, %s18509_s23, %s18510_s18  }
 0xa64 PF: > { %s15880_s15 = sand.u32 1, %s18488_s13   ;;  %p19820_p10 = scmp.ne.s32.totalorder %s19817_s25, 0 }
 0xa65   : > { %p19821_p0 = scmp.ge.s32.totalorder %s18500_s16, 2  ;;  %s15881_s19 = scalar_lea.sflag [#allocation4], %s15880_s15 }
 0xa67   : > { %p18350_p2 = pnand %p19821_p0, %p19820_p10 }
 0xa69   : > { %18483 = dma.done.wait (!%p18350_p2), %s15881_s19, 768  }
 0xa6a   : > { %18485 = vsyncadd (!%p18350_p2), %s15881_s19, 4294966528  ;;  %s19822_s16 = sld [smem:[#allocation9_spill]]  ;;  %s19823_s30 = sld [smem:[#allocation8_spill]] }
 0xa6b   : > { %s19824_s15 = sld [smem:[#allocation10_spill]]  ;;  %s19825_s13 = smov %s18492_s14 }
 0xa70   : > { %p24_p4 = scmp.ge.s32.totalorder %s19822_s16, 4   ;;  %s19826_s14 = smov %s19823_s30 }
 0xa72   :  { %26 = sbr.rel (!%p24_p4) target bundleno = 5 (0x5), region = 121 }
 0xa79   :  { %15894 = vsyncpa [#allocation3], 1 }
 0xa7a   :  { %15896 = vsyncpa [#allocation3 + $0x1], 1 }
 0xa7b   :  { %15897 = vsyncpa [#allocation4], 1 }
 0xa7c   :  { %15899 = vsyncpa [#allocation4 + $0x1], 1 }

</bundles_post_ra>
